<compile_context>
chip_gen: v6e
topology: v6e:2x2x1
jax: 0.10.0
libtpu: 0.0.40
codegen_flags: <defaults>
</compile_context>

<pallas_src>
import functools

import jax
import jax.numpy as jnp
from jax import lax
from jax.experimental import pallas as pl
from jax.experimental.pallas import tpu as pltpu

NEG_SLOPE = 0.2  # nn.LeakyReLU(0.2)

_VMEM_LIMIT = 32 * 1024 * 1024
_VMEM_BUDGET = 12 * 1024 * 1024  # per-step working-set budget (double-buffered)


def _round_up(x, m):
    return ((x + m - 1) // m) * m


# ----------------------------------------------------------------------------
# Pallas kernel: fused conv-GEMM  (patches @ W + b [+ scaled extras] [+ leaky])
# ----------------------------------------------------------------------------
def _conv_gemm_kernel(*refs, n_extra, extra_scale, neg_slope):
    p_ref, w_ref, b_ref = refs[0], refs[1], refs[2]
    extra_refs = refs[3:3 + n_extra]
    o_ref = refs[3 + n_extra]

    acc = jnp.dot(
        p_ref[...],
        w_ref[...],
        preferred_element_type=jnp.float32,
    )
    acc = acc + b_ref[...]

    if n_extra:
        ex = extra_refs[0][...]
        for r in extra_refs[1:]:
            ex = ex + r[...]
        acc = acc + jnp.float32(extra_scale) * ex

    if neg_slope is not None:
        acc = jnp.where(acc >= 0.0, acc, jnp.float32(neg_slope) * acc)

    o_ref[...] = acc.astype(o_ref.dtype)


def _pick_row_tile(M, K, C_out, n_extra):
    """Largest row tile that (a) is a multiple of 8, (b) <= 512, (c) keeps the
    double-buffered working set under the VMEM budget."""
    bytes_per_row = 4 * (K + (1 + n_extra) * C_out)
    # weight + bias are replicated (single buffer each)
    fixed = 4 * (K * C_out + C_out)
    tm = 512
    while tm > 8 and (2 * tm * bytes_per_row + fixed) > _VMEM_BUDGET:
        tm //= 2
    tm = max(tm, 8)
    if M < tm:
        tm = _round_up(max(M, 1), 8)
    return tm


def _conv_gemm(patches, w2d, bias, extras=(), extra_scale=1.0, neg_slope=None):
    """patches: (M, K); w2d: (K, C_out); bias: (C_out,); extras: (M, C_out) each."""
    M, K = patches.shape
    C_out = w2d.shape[1]

    tm = _pick_row_tile(M, K, C_out, len(extras))
    m_pad = _round_up(M, tm)
    if m_pad != M:
        pad = ((0, m_pad - M), (0, 0))
        patches = jnp.pad(patches, pad)
        extras = tuple(jnp.pad(e, pad) for e in extras)

    bias2d = bias.reshape(1, C_out).astype(jnp.float32)

    grid = (m_pad // tm,)
    row_spec = pl.BlockSpec((tm, K), lambda i: (i, 0))
    w_spec = pl.BlockSpec((K, C_out), lambda i: (0, 0))       # replicated
    b_spec = pl.BlockSpec((1, C_out), lambda i: (0, 0))       # replicated
    extra_spec = pl.BlockSpec((tm, C_out), lambda i: (i, 0))
    out_spec = pl.BlockSpec((tm, C_out), lambda i: (i, 0))

    kernel = functools.partial(
        _conv_gemm_kernel,
        n_extra=len(extras),
        extra_scale=extra_scale,
        neg_slope=neg_slope,
    )

    flops = 2 * m_pad * K * C_out + 4 * m_pad * C_out * (1 + len(extras))
    bytes_accessed = 4 * (m_pad * K + K * C_out + C_out
                          + m_pad * C_out * (1 + len(extras)))

    out = pl.pallas_call(
        kernel,
        out_shape=jax.ShapeDtypeStruct((m_pad, C_out), jnp.float32),
        grid_spec=pltpu.PrefetchScalarGridSpec(
            num_scalar_prefetch=0,
            grid=grid,
            in_specs=[row_spec, w_spec, b_spec] + [extra_spec] * len(extras),
            out_specs=out_spec,
        ),
        compiler_params=pltpu.CompilerParams(
            dimension_semantics=("parallel",),
            vmem_limit_bytes=_VMEM_LIMIT,
        ),
        cost_estimate=pl.CostEstimate(
            flops=flops, transcendentals=0, bytes_accessed=bytes_accessed),
    )(patches.astype(jnp.float32), w2d.astype(jnp.float32), bias2d,
      *[e.astype(jnp.float32) for e in extras])

    return out[:M]


# ----------------------------------------------------------------------------
# Conv wrapper: im2col (layout plumbing) + fused Pallas GEMM
# ----------------------------------------------------------------------------
def conv2d(x, w_oihw, bias, *, stride, padding, neg_slope=None,
           extras=(), extra_scale=1.0):
    """x: (N, H, W, C_in) NHWC.  w: (C_out, C_in, kh, kw) (PyTorch OIHW).
    `extras` are NHWC arrays with the conv's output shape; they are summed,
    scaled by `extra_scale`, and added before the activation (used to fuse
    the residual-block avg-pool + add).  Returns NHWC output."""
    N, H, W, C_in = x.shape
    C_out, C_in_w, kh, kw = w_oihw.shape
    assert C_in == C_in_w

    H_out = (H + 2 * padding - kh) // stride + 1
    W_out = (W + 2 * padding - kw) // stride + 1

    if padding:
        x = jnp.pad(x, ((0, 0), (padding, padding), (padding, padding), (0, 0)))

    # im2col patch extraction (pure layout; all compute is in the Pallas GEMM).
    cols = []
    for dy in range(kh):
        for dx in range(kw):
            cols.append(
                x[:, dy:dy + stride * H_out:stride,
                  dx:dx + stride * W_out:stride, :])
    patches = jnp.concatenate(cols, axis=-1).reshape(
        N * H_out * W_out, kh * kw * C_in)

    # (C_out, C_in, kh, kw) -> (kh, kw, C_in, C_out) -> (K, C_out); matches the
    # (dy, dx, c_in) ordering used to build `patches`.
    w2d = jnp.transpose(w_oihw, (2, 3, 1, 0)).reshape(kh * kw * C_in, C_out)

    extras2d = tuple(e.reshape(N * H_out * W_out, C_out) for e in extras)

    out = _conv_gemm(patches, w2d, bias, extras=extras2d,
                     extra_scale=extra_scale, neg_slope=neg_slope)
    return out.reshape(N, H_out, W_out, C_out)


# ----------------------------------------------------------------------------
# Spectral normalization (parameter preprocessing, plain JAX)
# ----------------------------------------------------------------------------
def spectral_normalize(w, n_iter=30, eps=1e-12):
    """w / sigma_max(w.reshape(C_out, -1)).
    # TODO(synk): PyTorch's spectral_norm keeps a persistent randomly-initialized
    # power-iteration vector (1 step per forward); here power iteration is run to
    # convergence, giving the true spectral norm (same forward semantics)."""
    c_out = w.shape[0]
    mat = w.reshape(c_out, -1).astype(jnp.float32)
    u = jnp.full((c_out,), 1.0 / (c_out ** 0.5), dtype=jnp.float32)
    v = None
    for _ in range(n_iter):
        v = mat.T @ u
        v = v / (jnp.linalg.norm(v) + eps)
        u = mat @ v
        u = u / (jnp.linalg.norm(u) + eps)
    sigma = u @ (mat @ v)
    return w / sigma


# ----------------------------------------------------------------------------
# Discriminator forward (Pallas path)
# ----------------------------------------------------------------------------
@jax.jit
def discriminator_forward(x_nchw, params):
    x = jnp.transpose(x_nchw, (0, 2, 3, 1))  # NCHW -> NHWC (internal layout)

    # First conv (spectral-norm) + LeakyReLU(0.2), fused.
    x = conv2d(x, spectral_normalize(params["conv0_w"]), params["conv0_b"],
               stride=2, padding=1, neg_slope=NEG_SLOPE)

    for blk in params["blocks"]:
        # ResidualBlock: conv1 (SN) + leaky, conv2 (SN)
        h = conv2d(x, spectral_normalize(blk["conv1_w"]), blk["conv1_b"],
                   stride=1, padding=1, neg_slope=NEG_SLOPE)
        h = conv2d(h, spectral_normalize(blk["conv2_w"]), blk["conv2_b"],
                   stride=1, padding=1, neg_slope=None)
        # 2x2 avg pool of h, expressed as 4 shifted views averaged in the fused
        # shortcut-conv kernel below (extra_scale = 0.25).
        pools = (h[:, 0::2, 0::2, :], h[:, 0::2, 1::2, :],
                 h[:, 1::2, 0::2, :], h[:, 1::2, 1::2, :])
        # Shortcut 1x1 stride-2 conv + pooled add + block LeakyReLU(0.2) + the
        # Discriminator's extra LeakyReLU(0.2)  ==  single leaky with slope 0.04.
        x = conv2d(x, blk["ds_w"], blk["ds_b"], stride=2, padding=0,
                   neg_slope=NEG_SLOPE * NEG_SLOPE,
                   extras=pools, extra_scale=0.25)

    # Final conv (no SN, no activation) + Flatten.
    x = conv2d(x, params["final_w"], params["final_b"],
               stride=1, padding=0, neg_slope=None)
    return x.reshape(x.shape[0], -1)


# ----------------------------------------------------------------------------
# Pure-JAX reference mirroring the PyTorch module
# ----------------------------------------------------------------------------
def discriminator_ref(x, params):
    def conv(x, w, b, stride, padding):
        out = lax.conv_general_dilated(
            x, w, (stride, stride), [(padding, padding), (padding, padding)],
            dimension_numbers=("NCHW", "OIHW", "NCHW"))
        return out + b[None, :, None, None]

    def leaky(z, a=NEG_SLOPE):
        return jnp.where(z >= 0, z, a * z)

    x = leaky(conv(x, spectral_normalize(params["conv0_w"]),
                   params["conv0_b"], 2, 1))
    for blk in params["blocks"]:
        h = leaky(conv(x, spectral_normalize(blk["conv1_w"]), blk["conv1_b"], 1, 1))
        h = conv(h, spectral_normalize(blk["conv2_w"]), blk["conv2_b"], 1, 1)
        N, C, H, W = h.shape
        h = h.reshape(N, C, H // 2, 2, W // 2, 2).mean(axis=(3, 5))  # avg_pool2d(2)
        r = conv(x, blk["ds_w"], blk["ds_b"], 2, 0)
        x = leaky(leaky(h + r))   # block act2, then the model's extra LeakyReLU
    x = conv(x, params["final_w"], params["final_b"], 1, 0)
    return x.reshape(x.shape[0], -1)


# ----------------------------------------------------------------------------
# Parameter init (deterministic, PyTorch Conv2d-like uniform bounds)
# ----------------------------------------------------------------------------
def _conv_init(key, c_out, c_in, k):
    kw_, kb_ = jax.random.split(key)
    bound = 1.0 / ((c_in * k * k) ** 0.5)
    w = jax.random.uniform(kw_, (c_out, c_in, k, k), jnp.float32, -bound, bound)
    b = jax.random.uniform(kb_, (c_out,), jnp.float32, -bound, bound)
    return w, b


def init_params(key, input_channels, hidden_dim, num_layers):
    params = {}
    key, k0 = jax.random.split(key)
    params["conv0_w"], params["conv0_b"] = _conv_init(k0, hidden_dim,
                                                      input_channels, 4)
    blocks = []
    hd = hidden_dim
    for _ in range(num_layers - 1):
        key, k1, k2, k3 = jax.random.split(key, 4)
        blk = {}
        blk["conv1_w"], blk["conv1_b"] = _conv_init(k1, hd * 2, hd, 3)
        blk["conv2_w"], blk["conv2_b"] = _conv_init(k2, hd * 2, hd * 2, 3)
        blk["ds_w"], blk["ds_b"] = _conv_init(k3, hd * 2, hd, 1)
        blocks.append(blk)
        hd *= 2
    params["blocks"] = blocks
    key, kf = jax.random.split(key)
    params["final_w"], params["final_b"] = _conv_init(kf, 1, hd, 4)
    return params


if __name__ == "__main__":
    # Small shapes consistent with the module: Discriminator(3, 8, 2) on 16x16.
    N, input_channels, H, W = 2, 3, 16, 16
    hidden_dim, num_layers = 8, 2

    key = jax.random.PRNGKey(0)
    key, kx, kp = jax.random.split(key, 3)
    x = jax.random.normal(kx, (N, input_channels, H, W), dtype=jnp.float32)
    params = init_params(kp, input_channels, hidden_dim, num_layers)

    out = discriminator_forward(x, params)
    out = jax.block_until_ready(out)

    ref = discriminator_ref(x, params)
    assert out.shape == (N, 1) and ref.shape == (N, 1), out.shape
    max_diff = float(jnp.max(jnp.abs(out - ref)))
    assert jnp.allclose(out, ref, atol=1e-3, rtol=1e-3), (
        f"max abs diff = {max_diff}")

    print("KERNEL_OK")
</pallas_src>

<mosaic_0001>
module attributes {stable_mosaic.version = 11 : i64} {
  func.func @_conv_gemm_kernel(%arg0: i32, %arg1: memref<128x48xf32, #tpu.memory_space<vmem>>, %arg2: memref<48x8xf32, #tpu.memory_space<vmem>>, %arg3: memref<1x8xf32, #tpu.memory_space<vmem>>, %arg4: memref<128x8xf32, #tpu.memory_space<vmem>>) attributes {dimension_semantics = [#tpu.dimension_semantics<parallel>], iteration_bounds = array<i64: 1>, scalar_prefetch = 0 : i64, scratch_operands = 0 : i64, tpu.core_type = #tpu.core_type<tc>, window_params = [{transform_indices = @transform_0, window_bounds = array<i64: 128, 48>}, {pipeline_mode = #tpu.pipeline_mode<synchronous>, transform_indices = @transform_1, window_bounds = array<i64: 48, 8>}, {pipeline_mode = #tpu.pipeline_mode<synchronous>, transform_indices = @transform_2, window_bounds = array<i64: 1, 8>}, {transform_indices = @transform_3, window_bounds = array<i64: 128, 8>}]} {
    %c0 = arith.constant 0 : index
    %c0_0 = arith.constant 0 : index
    %0 = vector.load %arg1[%c0, %c0_0] : memref<128x48xf32, #tpu.memory_space<vmem>>, vector<128x48xf32>
    %c0_1 = arith.constant 0 : index
    %c0_2 = arith.constant 0 : index
    %1 = vector.load %arg2[%c0_1, %c0_2] : memref<48x8xf32, #tpu.memory_space<vmem>>, vector<48x8xf32>
    %cst = arith.constant dense<0.000000e+00> : vector<128x8xf32>
    %2 = tpu.matmul %0, %1, %cst {dimension_numbers = #tpu.dot_dimension_numbers<[1], [0], [0], [1], [0, 0, 1, 1], [], []>} : vector<128x48xf32>, vector<48x8xf32>, vector<128x8xf32> -> vector<128x8xf32>
    %c0_3 = arith.constant 0 : index
    %c0_4 = arith.constant 0 : index
    %3 = vector.load %arg3[%c0_3, %c0_4] : memref<1x8xf32, #tpu.memory_space<vmem>>, vector<1x8xf32>
    %4 = vector.broadcast %3 : vector<1x8xf32> to vector<128x8xf32>
    %5 = arith.addf %2, %4 : vector<128x8xf32>
    %cst_5 = arith.constant 0.000000e+00 : f32
    %6 = vector.broadcast %cst_5 : f32 to vector<128x8xf32>
    %7 = arith.cmpf oge, %5, %6 : vector<128x8xf32>
    %cst_6 = arith.constant 2.000000e-01 : f32
    %8 = vector.broadcast %cst_6 : f32 to vector<128x8xf32>
    %9 = arith.mulf %8, %5 : vector<128x8xf32>
    %10 = arith.select %7, %5, %9 : vector<128x8xi1>, vector<128x8xf32>
    %c0_7 = arith.constant 0 : index
    %c0_8 = arith.constant 0 : index
    %11 = vector.load %arg4[%c0_7, %c0_8] : memref<128x8xf32, #tpu.memory_space<vmem>>, vector<128x8xf32>
    tpu.vector_store %arg4[%c0_7, %c0_8], %10 {strides = array<i32>} : memref<128x8xf32, #tpu.memory_space<vmem>>, vector<128x8xf32>,
    return
  }
  func.func @transform_0(%arg0: i32) -> (i32, i32) {
    %c0_i32 = arith.constant 0 : i32
    %c0_i32_0 = arith.constant 0 : i32
    return %arg0, %c0_i32 : i32, i32
  }
  func.func @transform_1(%arg0: i32) -> (i32, i32) {
    %c0_i32 = arith.constant 0 : i32
    %c0_i32_0 = arith.constant 0 : i32
    %c0_i32_1 = arith.constant 0 : i32
    return %c0_i32, %c0_i32_0 : i32, i32
  }
  func.func @transform_2(%arg0: i32) -> (i32, i32) {
    %c0_i32 = arith.constant 0 : i32
    %c0_i32_0 = arith.constant 0 : i32
    %c0_i32_1 = arith.constant 0 : i32
    return %c0_i32, %c0_i32_0 : i32, i32
  }
  func.func @transform_3(%arg0: i32) -> (i32, i32) {
    %c0_i32 = arith.constant 0 : i32
    %c0_i32_0 = arith.constant 0 : i32
    return %arg0, %c0_i32 : i32, i32
  }
}

module attributes {stable_mosaic.version = 11 : i64} {
  func.func @_conv_gemm_kernel(%arg0: i32, %arg1: memref<128x72xf32, #tpu.memory_space<vmem>>, %arg2: memref<72x16xf32, #tpu.memory_space<vmem>>, %arg3: memref<1x16xf32, #tpu.memory_space<vmem>>, %arg4: memref<128x16xf32, #tpu.memory_space<vmem>>) attributes {dimension_semantics = [#tpu.dimension_semantics<parallel>], iteration_bounds = array<i64: 1>, scalar_prefetch = 0 : i64, scratch_operands = 0 : i64, tpu.core_type = #tpu.core_type<tc>, window_params = [{transform_indices = @transform_0, window_bounds = array<i64: 128, 72>}, {pipeline_mode = #tpu.pipeline_mode<synchronous>, transform_indices = @transform_1, window_bounds = array<i64: 72, 16>}, {pipeline_mode = #tpu.pipeline_mode<synchronous>, transform_indices = @transform_2, window_bounds = array<i64: 1, 16>}, {transform_indices = @transform_3, window_bounds = array<i64: 128, 16>}]} {
    %c0 = arith.constant 0 : index
    %c0_0 = arith.constant 0 : index
    %0 = vector.load %arg1[%c0, %c0_0] : memref<128x72xf32, #tpu.memory_space<vmem>>, vector<128x72xf32>
    %c0_1 = arith.constant 0 : index
    %c0_2 = arith.constant 0 : index
    %1 = vector.load %arg2[%c0_1, %c0_2] : memref<72x16xf32, #tpu.memory_space<vmem>>, vector<72x16xf32>
    %cst = arith.constant dense<0.000000e+00> : vector<128x16xf32>
    %2 = tpu.matmul %0, %1, %cst {dimension_numbers = #tpu.dot_dimension_numbers<[1], [0], [0], [1], [0, 0, 1, 1], [], []>} : vector<128x72xf32>, vector<72x16xf32>, vector<128x16xf32> -> vector<128x16xf32>
    %c0_3 = arith.constant 0 : index
    %c0_4 = arith.constant 0 : index
    %3 = vector.load %arg3[%c0_3, %c0_4] : memref<1x16xf32, #tpu.memory_space<vmem>>, vector<1x16xf32>
    %4 = vector.broadcast %3 : vector<1x16xf32> to vector<128x16xf32>
    %5 = arith.addf %2, %4 : vector<128x16xf32>
    %cst_5 = arith.constant 0.000000e+00 : f32
    %6 = vector.broadcast %cst_5 : f32 to vector<128x16xf32>
    %7 = arith.cmpf oge, %5, %6 : vector<128x16xf32>
    %cst_6 = arith.constant 2.000000e-01 : f32
    %8 = vector.broadcast %cst_6 : f32 to vector<128x16xf32>
    %9 = arith.mulf %8, %5 : vector<128x16xf32>
    %10 = arith.select %7, %5, %9 : vector<128x16xi1>, vector<128x16xf32>
    %c0_7 = arith.constant 0 : index
    %c0_8 = arith.constant 0 : index
    %11 = vector.load %arg4[%c0_7, %c0_8] : memref<128x16xf32, #tpu.memory_space<vmem>>, vector<128x16xf32>
    tpu.vector_store %arg4[%c0_7, %c0_8], %10 {strides = array<i32>} : memref<128x16xf32, #tpu.memory_space<vmem>>, vector<128x16xf32>,
    return
  }
  func.func @transform_0(%arg0: i32) -> (i32, i32) {
    %c0_i32 = arith.constant 0 : i32
    %c0_i32_0 = arith.constant 0 : i32
    return %arg0, %c0_i32 : i32, i32
  }
  func.func @transform_1(%arg0: i32) -> (i32, i32) {
    %c0_i32 = arith.constant 0 : i32
    %c0_i32_0 = arith.constant 0 : i32
    %c0_i32_1 = arith.constant 0 : i32
    return %c0_i32, %c0_i32_0 : i32, i32
  }
  func.func @transform_2(%arg0: i32) -> (i32, i32) {
    %c0_i32 = arith.constant 0 : i32
    %c0_i32_0 = arith.constant 0 : i32
    %c0_i32_1 = arith.constant 0 : i32
    return %c0_i32, %c0_i32_0 : i32, i32
  }
  func.func @transform_3(%arg0: i32) -> (i32, i32) {
    %c0_i32 = arith.constant 0 : i32
    %c0_i32_0 = arith.constant 0 : i32
    return %arg0, %c0_i32 : i32, i32
  }
}

module attributes {stable_mosaic.version = 11 : i64} {
  func.func @_conv_gemm_kernel(%arg0: i32, %arg1: memref<128x144xf32, #tpu.memory_space<vmem>>, %arg2: memref<144x16xf32, #tpu.memory_space<vmem>>, %arg3: memref<1x16xf32, #tpu.memory_space<vmem>>, %arg4: memref<128x16xf32, #tpu.memory_space<vmem>>) attributes {dimension_semantics = [#tpu.dimension_semantics<parallel>], iteration_bounds = array<i64: 1>, scalar_prefetch = 0 : i64, scratch_operands = 0 : i64, tpu.core_type = #tpu.core_type<tc>, window_params = [{transform_indices = @transform_0, window_bounds = array<i64: 128, 144>}, {pipeline_mode = #tpu.pipeline_mode<synchronous>, transform_indices = @transform_1, window_bounds = array<i64: 144, 16>}, {pipeline_mode = #tpu.pipeline_mode<synchronous>, transform_indices = @transform_2, window_bounds = array<i64: 1, 16>}, {transform_indices = @transform_3, window_bounds = array<i64: 128, 16>}]} {
    %c0 = arith.constant 0 : index
    %c0_0 = arith.constant 0 : index
    %0 = vector.load %arg1[%c0, %c0_0] : memref<128x144xf32, #tpu.memory_space<vmem>>, vector<128x144xf32>
    %c0_1 = arith.constant 0 : index
    %c0_2 = arith.constant 0 : index
    %1 = vector.load %arg2[%c0_1, %c0_2] : memref<144x16xf32, #tpu.memory_space<vmem>>, vector<144x16xf32>
    %cst = arith.constant dense<0.000000e+00> : vector<128x16xf32>
    %2 = tpu.matmul %0, %1, %cst {dimension_numbers = #tpu.dot_dimension_numbers<[1], [0], [0], [1], [0, 0, 1, 1], [], []>} : vector<128x144xf32>, vector<144x16xf32>, vector<128x16xf32> -> vector<128x16xf32>
    %c0_3 = arith.constant 0 : index
    %c0_4 = arith.constant 0 : index
    %3 = vector.load %arg3[%c0_3, %c0_4] : memref<1x16xf32, #tpu.memory_space<vmem>>, vector<1x16xf32>
    %4 = vector.broadcast %3 : vector<1x16xf32> to vector<128x16xf32>
    %5 = arith.addf %2, %4 : vector<128x16xf32>
    %c0_5 = arith.constant 0 : index
    %c0_6 = arith.constant 0 : index
    %6 = vector.load %arg4[%c0_5, %c0_6] : memref<128x16xf32, #tpu.memory_space<vmem>>, vector<128x16xf32>
    tpu.vector_store %arg4[%c0_5, %c0_6], %5 {strides = array<i32>} : memref<128x16xf32, #tpu.memory_space<vmem>>, vector<128x16xf32>,
    return
  }
  func.func @transform_0(%arg0: i32) -> (i32, i32) {
    %c0_i32 = arith.constant 0 : i32
    %c0_i32_0 = arith.constant 0 : i32
    return %arg0, %c0_i32 : i32, i32
  }
  func.func @transform_1(%arg0: i32) -> (i32, i32) {
    %c0_i32 = arith.constant 0 : i32
    %c0_i32_0 = arith.constant 0 : i32
    %c0_i32_1 = arith.constant 0 : i32
    return %c0_i32, %c0_i32_0 : i32, i32
  }
  func.func @transform_2(%arg0: i32) -> (i32, i32) {
    %c0_i32 = arith.constant 0 : i32
    %c0_i32_0 = arith.constant 0 : i32
    %c0_i32_1 = arith.constant 0 : i32
    return %c0_i32, %c0_i32_0 : i32, i32
  }
  func.func @transform_3(%arg0: i32) -> (i32, i32) {
    %c0_i32 = arith.constant 0 : i32
    %c0_i32_0 = arith.constant 0 : i32
    return %arg0, %c0_i32 : i32, i32
  }
}

module attributes {stable_mosaic.version = 11 : i64} {
  func.func @_conv_gemm_kernel(%arg0: i32, %arg1: memref<32x8xf32, #tpu.memory_space<vmem>>, %arg2: memref<8x16xf32, #tpu.memory_space<vmem>>, %arg3: memref<1x16xf32, #tpu.memory_space<vmem>>, %arg4: memref<32x16xf32, #tpu.memory_space<vmem>>, %arg5: memref<32x16xf32, #tpu.memory_space<vmem>>, %arg6: memref<32x16xf32, #tpu.memory_space<vmem>>, %arg7: memref<32x16xf32, #tpu.memory_space<vmem>>, %arg8: memref<32x16xf32, #tpu.memory_space<vmem>>) attributes {dimension_semantics = [#tpu.dimension_semantics<parallel>], iteration_bounds = array<i64: 1>, scalar_prefetch = 0 : i64, scratch_operands = 0 : i64, tpu.core_type = #tpu.core_type<tc>, window_params = [{transform_indices = @transform_0, window_bounds = array<i64: 32, 8>}, {pipeline_mode = #tpu.pipeline_mode<synchronous>, transform_indices = @transform_1, window_bounds = array<i64: 8, 16>}, {pipeline_mode = #tpu.pipeline_mode<synchronous>, transform_indices = @transform_2, window_bounds = array<i64: 1, 16>}, {transform_indices = @transform_3, window_bounds = array<i64: 32, 16>}, {transform_indices = @transform_4, window_bounds = array<i64: 32, 16>}, {transform_indices = @transform_5, window_bounds = array<i64: 32, 16>}, {transform_indices = @transform_6, window_bounds = array<i64: 32, 16>}, {transform_indices = @transform_7, window_bounds = array<i64: 32, 16>}]} {
    %c0 = arith.constant 0 : index
    %c0_0 = arith.constant 0 : index
    %0 = vector.load %arg1[%c0, %c0_0] : memref<32x8xf32, #tpu.memory_space<vmem>>, vector<32x8xf32>
    %c0_1 = arith.constant 0 : index
    %c0_2 = arith.constant 0 : index
    %1 = vector.load %arg2[%c0_1, %c0_2] : memref<8x16xf32, #tpu.memory_space<vmem>>, vector<8x16xf32>
    %cst = arith.constant dense<0.000000e+00> : vector<32x16xf32>
    %2 = tpu.matmul %0, %1, %cst {dimension_numbers = #tpu.dot_dimension_numbers<[1], [0], [0], [1], [0, 0, 1, 1], [], []>} : vector<32x8xf32>, vector<8x16xf32>, vector<32x16xf32> -> vector<32x16xf32>
    %c0_3 = arith.constant 0 : index
    %c0_4 = arith.constant 0 : index
    %3 = vector.load %arg3[%c0_3, %c0_4] : memref<1x16xf32, #tpu.memory_space<vmem>>, vector<1x16xf32>
    %4 = vector.broadcast %3 : vector<1x16xf32> to vector<32x16xf32>
    %5 = arith.addf %2, %4 : vector<32x16xf32>
    %c0_5 = arith.constant 0 : index
    %c0_6 = arith.constant 0 : index
    %6 = vector.load %arg4[%c0_5, %c0_6] : memref<32x16xf32, #tpu.memory_space<vmem>>, vector<32x16xf32>
    %c0_7 = arith.constant 0 : index
    %c0_8 = arith.constant 0 : index
    %7 = vector.load %arg5[%c0_7, %c0_8] : memref<32x16xf32, #tpu.memory_space<vmem>>, vector<32x16xf32>
    %8 = arith.addf %6, %7 : vector<32x16xf32>
    %c0_9 = arith.constant 0 : index
    %c0_10 = arith.constant 0 : index
    %9 = vector.load %arg6[%c0_9, %c0_10] : memref<32x16xf32, #tpu.memory_space<vmem>>, vector<32x16xf32>
    %10 = arith.addf %8, %9 : vector<32x16xf32>
    %c0_11 = arith.constant 0 : index
    %c0_12 = arith.constant 0 : index
    %11 = vector.load %arg7[%c0_11, %c0_12] : memref<32x16xf32, #tpu.memory_space<vmem>>, vector<32x16xf32>
    %12 = arith.addf %10, %11 : vector<32x16xf32>
    %cst_13 = arith.constant 2.500000e-01 : f32
    %13 = vector.broadcast %cst_13 : f32 to vector<32x16xf32>
    %14 = arith.mulf %13, %12 : vector<32x16xf32>
    %15 = arith.addf %5, %14 : vector<32x16xf32>
    %cst_14 = arith.constant 0.000000e+00 : f32
    %16 = vector.broadcast %cst_14 : f32 to vector<32x16xf32>
    %17 = arith.cmpf oge, %15, %16 : vector<32x16xf32>
    %cst_15 = arith.constant 4.000000e-02 : f32
    %18 = vector.broadcast %cst_15 : f32 to vector<32x16xf32>
    %19 = arith.mulf %18, %15 : vector<32x16xf32>
    %20 = arith.select %17, %15, %19 : vector<32x16xi1>, vector<32x16xf32>
    %c0_16 = arith.constant 0 : index
    %c0_17 = arith.constant 0 : index
    %21 = vector.load %arg8[%c0_16, %c0_17] : memref<32x16xf32, #tpu.memory_space<vmem>>, vector<32x16xf32>
    tpu.vector_store %arg8[%c0_16, %c0_17], %20 {strides = array<i32>} : memref<32x16xf32, #tpu.memory_space<vmem>>, vector<32x16xf32>,
    return
  }
  func.func @transform_0(%arg0: i32) -> (i32, i32) {
    %c0_i32 = arith.constant 0 : i32
    %c0_i32_0 = arith.constant 0 : i32
    return %arg0, %c0_i32 : i32, i32
  }
  func.func @transform_1(%arg0: i32) -> (i32, i32) {
    %c0_i32 = arith.constant 0 : i32
    %c0_i32_0 = arith.constant 0 : i32
    %c0_i32_1 = arith.constant 0 : i32
    return %c0_i32, %c0_i32_0 : i32, i32
  }
  func.func @transform_2(%arg0: i32) -> (i32, i32) {
    %c0_i32 = arith.constant 0 : i32
    %c0_i32_0 = arith.constant 0 : i32
    %c0_i32_1 = arith.constant 0 : i32
    return %c0_i32, %c0_i32_0 : i32, i32
  }
  func.func @transform_3(%arg0: i32) -> (i32, i32) {
    %c0_i32 = arith.constant 0 : i32
    %c0_i32_0 = arith.constant 0 : i32
    return %arg0, %c0_i32 : i32, i32
  }
  func.func @transform_4(%arg0: i32) -> (i32, i32) {
    %c0_i32 = arith.constant 0 : i32
    %c0_i32_0 = arith.constant 0 : i32
    return %arg0, %c0_i32 : i32, i32
  }
  func.func @transform_5(%arg0: i32) -> (i32, i32) {
    %c0_i32 = arith.constant 0 : i32
    %c0_i32_0 = arith.constant 0 : i32
    return %arg0, %c0_i32 : i32, i32
  }
  func.func @transform_6(%arg0: i32) -> (i32, i32) {
    %c0_i32 = arith.constant 0 : i32
    %c0_i32_0 = arith.constant 0 : i32
    return %arg0, %c0_i32 : i32, i32
  }
  func.func @transform_7(%arg0: i32) -> (i32, i32) {
    %c0_i32 = arith.constant 0 : i32
    %c0_i32_0 = arith.constant 0 : i32
    return %arg0, %c0_i32 : i32, i32
  }
}

module attributes {stable_mosaic.version = 11 : i64} {
  func.func @_conv_gemm_kernel(%arg0: i32, %arg1: memref<8x256xf32, #tpu.memory_space<vmem>>, %arg2: memref<256x1xf32, #tpu.memory_space<vmem>>, %arg3: memref<1x1xf32, #tpu.memory_space<vmem>>, %arg4: memref<8x1xf32, #tpu.memory_space<vmem>>) attributes {dimension_semantics = [#tpu.dimension_semantics<parallel>], iteration_bounds = array<i64: 1>, scalar_prefetch = 0 : i64, scratch_operands = 0 : i64, tpu.core_type = #tpu.core_type<tc>, window_params = [{transform_indices = @transform_0, window_bounds = array<i64: 8, 256>}, {pipeline_mode = #tpu.pipeline_mode<synchronous>, transform_indices = @transform_1, window_bounds = array<i64: 256, 1>}, {pipeline_mode = #tpu.pipeline_mode<synchronous>, transform_indices = @transform_2, window_bounds = array<i64: 1, 1>}, {transform_indices = @transform_3, window_bounds = array<i64: 8, 1>}]} {
    %c0 = arith.constant 0 : index
    %c0_0 = arith.constant 0 : index
    %0 = vector.load %arg1[%c0, %c0_0] : memref<8x256xf32, #tpu.memory_space<vmem>>, vector<8x256xf32>
    %c0_1 = arith.constant 0 : index
    %c0_2 = arith.constant 0 : index
    %1 = vector.load %arg2[%c0_1, %c0_2] : memref<256x1xf32, #tpu.memory_space<vmem>>, vector<256x1xf32>
    %cst = arith.constant dense<0.000000e+00> : vector<8x1xf32>
    %2 = tpu.matmul %0, %1, %cst {dimension_numbers = #tpu.dot_dimension_numbers<[1], [0], [0], [1], [0, 0, 1, 1], [], []>} : vector<8x256xf32>, vector<256x1xf32>, vector<8x1xf32> -> vector<8x1xf32>
    %c0_3 = arith.constant 0 : index
    %c0_4 = arith.constant 0 : index
    %3 = vector.load %arg3[%c0_3, %c0_4] : memref<1x1xf32, #tpu.memory_space<vmem>>, vector<1x1xf32>
    %4 = vector.broadcast %3 : vector<1x1xf32> to vector<8x1xf32>
    %5 = arith.addf %2, %4 : vector<8x1xf32>
    %c0_5 = arith.constant 0 : index
    %c0_6 = arith.constant 0 : index
    %6 = vector.load %arg4[%c0_5, %c0_6] : memref<8x1xf32, #tpu.memory_space<vmem>>, vector<8x1xf32>
    tpu.vector_store %arg4[%c0_5, %c0_6], %5 {strides = array<i32>} : memref<8x1xf32, #tpu.memory_space<vmem>>, vector<8x1xf32>,
    return
  }
  func.func @transform_0(%arg0: i32) -> (i32, i32) {
    %c0_i32 = arith.constant 0 : i32
    %c0_i32_0 = arith.constant 0 : i32
    return %arg0, %c0_i32 : i32, i32
  }
  func.func @transform_1(%arg0: i32) -> (i32, i32) {
    %c0_i32 = arith.constant 0 : i32
    %c0_i32_0 = arith.constant 0 : i32
    %c0_i32_1 = arith.constant 0 : i32
    return %c0_i32, %c0_i32_0 : i32, i32
  }
  func.func @transform_2(%arg0: i32) -> (i32, i32) {
    %c0_i32 = arith.constant 0 : i32
    %c0_i32_0 = arith.constant 0 : i32
    %c0_i32_1 = arith.constant 0 : i32
    return %c0_i32, %c0_i32_0 : i32, i32
  }
  func.func @transform_3(%arg0: i32) -> (i32, i32) {
    %c0_i32 = arith.constant 0 : i32
    %c0_i32_0 = arith.constant 0 : i32
    return %arg0, %c0_i32 : i32, i32
  }
}

</mosaic_0001>

<bundles_post_ra>
// kernel: discriminator_forward.5
= control target key start
LH: loop header
LB: loop body
LE: loop exit
PB: predicated region body
PF: predicated region fallthrough
CT: control target
= control target key end

     0   :  { %vm43_vm0 = vcmask 392192   ;;  %vm285_vm1 = vcmask 64512   ;;  %s580_s1 = inlined_call_operand.vmem [shape: f32[48,8], index: 1, kind: input, shape index: {}]   ;;  %s581_s0 = inlined_call_operand.vmem [shape: f32[128,48], index: 0, kind: input, shape index: {}]   ;;  %s582_s2 = inlined_call_operand.vmem [shape: f32[1,8], index: 2, kind: input, shape index: {}]   ;;  %s583_s3 = inlined_call_operand.vmem [shape: f32[128,8], index: 3, kind: output, shape index: {}]  }
   0x1   :  { %v35_v0 = vld [vmem:[%s580_s1 + $0x28] sm:$0xff]  ;;  %v34_v1 = vld [vmem:[%s580_s1 + $0x20] sm:$0xff]  ;;  %v33_v2 = vld [vmem:[%s580_s1 + $0x18] sm:$0xff] }
   0x2   :  { %345 = vmatprep.subr.mxu0 %v35_v0  ;;  %381 = vmatprep.subr.mxu1 %v35_v0  ;;  %v32_v3 = vld [vmem:[%s580_s1 + $0x10] sm:$0xff]  ;;  %v31_v4 = vld [vmem:[%s580_s1 + $0x8] sm:$0xff]  ;;  %v30_v5 = vld [vmem:[%s580_s1] sm:$0xff] }
   0x3   :  { %346 = vmatpush3.msra.mxu0 %v35_v0  ;;  %387 = vmatpush3.msra.mxu1 %v35_v0  ;;  %v14_v6 = vld [vmem:[%s581_s0] sm:$0xff]  ;;  %v15_v8 = vld [vmem:[%s581_s0 + $0x8] sm:$0xff]  ;;  %v16_v10 = vld [vmem:[%s581_s0 + $0x10] sm:$0xff] }
   0x4   :  { %347 = vmatprep.subr.mxu0 %v34_v1  ;;  %382 = vmatprep.subr.mxu1 %v34_v1  ;;  %v22_v7 = vld [vmem:[%s581_s0 + $0x40] sm:$0xff]  ;;  %v23_v9 = vld [vmem:[%s581_s0 + $0x48] sm:$0xff]  ;;  %v24_v11 = vld [vmem:[%s581_s0 + $0x50] sm:$0xff] }
   0x5   :  { %348 = vmatpush3.msra.mxu0 %v34_v1  ;;  %388 = vmatpush3.msra.mxu1 %v34_v1  ;;  %v17_v12 = vld [vmem:[%s581_s0 + $0x18] sm:$0xff]  ;;  %v18_v14 = vld [vmem:[%s581_s0 + $0x20] sm:$0xff]  ;;  %v19_v16 = vld [vmem:[%s581_s0 + $0x28] sm:$0xff] }
   0x6   :  { %349 = vmatprep.subr.mxu0 %v33_v2  ;;  %383 = vmatprep.subr.mxu1 %v33_v2  ;;  %v25_v13 = vld [vmem:[%s581_s0 + $0x58] sm:$0xff]  ;;  %v26_v15 = vld [vmem:[%s581_s0 + $0x60] sm:$0xff]  ;;  %v27_v17 = vld [vmem:[%s581_s0 + $0x68] sm:$0xff] }
   0x7   :  { %350 = vmatpush3.msra.mxu0 %v33_v2  ;;  %389 = vmatpush3.msra.mxu1 %v33_v2  ;;  %v20_v18 = vld [vmem:[%s581_s0 + $0x30] sm:$0xff]  ;;  %v21_v20 = vld [vmem:[%s581_s0 + $0x38] sm:$0xff]  ;;  %v498_v22 = vld [vmem:[%s582_s2] ss:$0 sm:$0xff] }
   0x8   :  { %351 = vmatprep.subr.mxu0 %v32_v3  ;;  %384 = vmatprep.subr.mxu1 %v32_v3  ;;  %v28_v19 = vld [vmem:[%s581_s0 + $0x70] sm:$0xff]  ;;  %v29_v21 = vld [vmem:[%s581_s0 + $0x78] sm:$0xff] }
   0x9   :  { %352 = vmatpush3.msra.mxu0 %v32_v3  ;;  %390 = vmatpush3.msra.mxu1 %v32_v3 }
   0xa   :  { %353 = vmatprep.subr.mxu0 %v31_v4  ;;  %385 = vmatprep.subr.mxu1 %v31_v4 }
   0xb   :  { %354 = vmatpush3.msra.mxu0 %v31_v4  ;;  %391 = vmatpush3.msra.mxu1 %v31_v4 }
   0xc   :  { %355 = vmatprep.subr.mxu0 %v30_v5  ;;  %386 = vmatprep.subr.mxu1 %v30_v5 }
   0xd   :  { %356 = vmatpush3.msra.mxu0 %v30_v5  ;;  %392 = vmatpush3.msra.mxu1 %v30_v5 }
   0xe   :  { %357 = vmatprep.mubr.msk.f32.mxu0 %vm43_vm0, %v14_v6  ;;  %369 = vmatprep.mubr.msk.f32.mxu1 %vm43_vm0, %v22_v7 }
   0xf   :  { %358 = vmatmul.mubr.msk.f32.vlgmr.msra.gmra.mxu0 %vm43_vm0, %v15_v8  ;;  %370 = vmatmul.mubr.msk.f32.vlgmr.msra.gmra.mxu1 %vm43_vm0, %v23_v9 }
  0x10   :  { %360 = vmatprep.mubr.msk.f32.mxu0 %vm43_vm0, %v16_v10  ;;  %372 = vmatprep.mubr.msk.f32.mxu1 %vm43_vm0, %v24_v11 }
  0x13   :  { %361 = vmatmul.mubr.msk.f32.gmra.mxu0 %vm43_vm0, %v17_v12  ;;  %373 = vmatmul.mubr.msk.f32.gmra.mxu1 %vm43_vm0, %v25_v13 }
  0x14   :  { %363 = vmatprep.mubr.msk.f32.mxu0 %vm43_vm0, %v18_v14  ;;  %375 = vmatprep.mubr.msk.f32.mxu1 %vm43_vm0, %v26_v15 }
  0x17   :  { %364 = vmatmul.mubr.msk.f32.gmra.mxu0 %vm43_vm0, %v19_v16  ;;  %376 = vmatmul.mubr.msk.f32.gmra.mxu1 %vm43_vm0, %v27_v17 }
  0x18   :  { %366 = vmatprep.mubr.msk.f32.mxu0 %vm43_vm0, %v20_v18  ;;  %378 = vmatprep.mubr.msk.f32.mxu1 %vm43_vm0, %v28_v19 }
  0x1b   :  { %367 = vmatmul.mubr.msk.f32.gmra.mxu0 %vm43_vm0, %v21_v20  ;;  %379 = vmatmul.mubr.msk.f32.gmra.mxu1 %vm43_vm0, %v29_v21 }
  0xcf   :  { %v359_v23 = vpop.f32.mrf.mxu0  ;;  %v371_v24 = vpop.f32.mrf.mxu1 }
  0xd0   :  { %v164_v25 = vadd.f32 %v359_v23, %v498_v22  ;;  %v204_v26 = vadd.f32 %v371_v24, %v498_v22 }
  0xd1   :  { %v158_v27 = vpop.f32.mrf.mxu0  ;;  %v198_v28 = vpop.f32.mrf.mxu1 }
  0xd2   :  { %vm238_vm2 = vcmp.ge.f32.partialorder %v164_v25, 0.0  ;;  %v254_v29 = vmul.f32 0.2, %v164_v25  ;;  %vm246_vm3 = vcmp.ge.f32.partialorder %v204_v26, 0.0  ;;  %v262_v30 = vmul.f32 0.2, %v204_v26 }
  0xd3   :  { %v159_v31 = vadd.f32 %v498_v22, %v158_v27  ;;  %v199_v32 = vadd.f32 %v498_v22, %v198_v28  ;;  %v362_v33 = vpop.f32.mrf.mxu0  ;;  %v374_v34 = vpop.f32.mrf.mxu1 }
  0xd4   :  { %v270_v35 = vsel %vm238_vm2, %v164_v25, %v254_v29  ;;  %v278_v36 = vsel %vm246_vm3, %v204_v26, %v262_v30  ;;  %v174_v37 = vadd.f32 %v362_v33, %v498_v22  ;;  %v214_v38 = vadd.f32 %v374_v34, %v498_v22 }
  0xd5   :  { %287 = vst.msk [vmem:[%s583_s3 + $0x8] sm:$0xff] %vm285_vm1, %v270_v35  ;;  %295 = vst.msk [vmem:[%s583_s3 + $0x48] sm:$0xff] %vm285_vm1, %v278_v36  ;;  %vm237_vm4 = vcmp.ge.f32.partialorder %v159_v31, 0.0  ;;  %v253_v39 = vmul.f32 0.2, %v159_v31  ;;  %vm245_vm5 = vcmp.ge.f32.partialorder %v199_v32, 0.0  ;;  %v168_v41 = vpop.f32.mrf.mxu0  ;;  %v208_v42 = vpop.f32.mrf.mxu1 }
  0xd6   :  { %v261_v40 = vmul.f32 0.2, %v199_v32  ;;  %vm240_vm6 = vcmp.ge.f32.partialorder %v174_v37, 0.0  ;;  %v256_v43 = vmul.f32 0.2, %v174_v37  ;;  %vm248_vm7 = vcmp.ge.f32.partialorder %v214_v38, 0.0 }
  0xd7   :  { %v264_v44 = vmul.f32 0.2, %v214_v38  ;;  %v269_v45 = vsel %vm237_vm4, %v159_v31, %v253_v39  ;;  %v169_v47 = vadd.f32 %v498_v22, %v168_v41  ;;  %v209_v48 = vadd.f32 %v498_v22, %v208_v42  ;;  %v365_v49 = vpop.f32.mrf.mxu0  ;;  %v377_v50 = vpop.f32.mrf.mxu1 }
  0xd8   :  { %v277_v46 = vsel %vm245_vm5, %v199_v32, %v261_v40  ;;  %286 = vst.msk [vmem:[%s583_s3] sm:$0xff] %vm285_vm1, %v269_v45  ;;  %v272_v51 = vsel %vm240_vm6, %v174_v37, %v256_v43  ;;  %v184_v53 = vadd.f32 %v365_v49, %v498_v22  ;;  %v224_v54 = vadd.f32 %v377_v50, %v498_v22 }
  0xd9   :  { %294 = vst.msk [vmem:[%s583_s3 + $0x40] sm:$0xff] %vm285_vm1, %v277_v46  ;;  %v280_v52 = vsel %vm248_vm7, %v214_v38, %v264_v44  ;;  %289 = vst.msk [vmem:[%s583_s3 + $0x18] sm:$0xff] %vm285_vm1, %v272_v51  ;;  %vm239_vm8 = vcmp.ge.f32.partialorder %v169_v47, 0.0  ;;  %v255_v55 = vmul.f32 0.2, %v169_v47  ;;  %vm247_vm9 = vcmp.ge.f32.partialorder %v209_v48, 0.0  ;;  %v178_v57 = vpop.f32.mrf.mxu0  ;;  %v218_v58 = vpop.f32.mrf.mxu1 }
  0xda   :  { %297 = vst.msk [vmem:[%s583_s3 + $0x58] sm:$0xff] %vm285_vm1, %v280_v52  ;;  %v263_v56 = vmul.f32 0.2, %v209_v48  ;;  %vm242_vm10 = vcmp.ge.f32.partialorder %v184_v53, 0.0  ;;  %v258_v59 = vmul.f32 0.2, %v184_v53  ;;  %v179_v63 = vadd.f32 %v498_v22, %v178_v57 }
  0xdb   :  { %vm250_vm11 = vcmp.ge.f32.partialorder %v224_v54, 0.0  ;;  %v266_v60 = vmul.f32 0.2, %v224_v54  ;;  %v271_v61 = vsel %vm239_vm8, %v169_v47, %v255_v55  ;;  %v219_v0 = vadd.f32 %v498_v22, %v218_v58  ;;  %v368_v1 = vpop.f32.mrf.mxu0  ;;  %v380_v2 = vpop.f32.mrf.mxu1 }
  0xdc   :  { %v279_v62 = vsel %vm247_vm9, %v209_v48, %v263_v56  ;;  %288 = vst.msk [vmem:[%s583_s3 + $0x10] sm:$0xff] %vm285_vm1, %v271_v61  ;;  %v274_v3 = vsel %vm242_vm10, %v184_v53, %v258_v59  ;;  %v194_v5 = vadd.f32 %v368_v1, %v498_v22  ;;  %v234_v6 = vadd.f32 %v380_v2, %v498_v22 }
  0xdd   :  { %296 = vst.msk [vmem:[%s583_s3 + $0x50] sm:$0xff] %vm285_vm1, %v279_v62  ;;  %v282_v4 = vsel %vm250_vm11, %v224_v54, %v266_v60  ;;  %291 = vst.msk [vmem:[%s583_s3 + $0x28] sm:$0xff] %vm285_vm1, %v274_v3  ;;  %vm241_vm12 = vcmp.ge.f32.partialorder %v179_v63, 0.0  ;;  %v257_v7 = vmul.f32 0.2, %v179_v63  ;;  %vm249_vm13 = vcmp.ge.f32.partialorder %v219_v0, 0.0  ;;  %v188_v9 = vpop.f32.mrf.mxu0  ;;  %v228_v10 = vpop.f32.mrf.mxu1 }
  0xde   :  { %299 = vst.msk [vmem:[%s583_s3 + $0x68] sm:$0xff] %vm285_vm1, %v282_v4  ;;  %v265_v8 = vmul.f32 0.2, %v219_v0  ;;  %vm244_vm14 = vcmp.ge.f32.partialorder %v194_v5, 0.0  ;;  %v260_v11 = vmul.f32 0.2, %v194_v5  ;;  %v189_v15 = vadd.f32 %v498_v22, %v188_v9 }
  0xdf   :  { %vm252_vm15 = vcmp.ge.f32.partialorder %v234_v6, 0.0  ;;  %v268_v12 = vmul.f32 0.2, %v234_v6  ;;  %v273_v13 = vsel %vm241_vm12, %v179_v63, %v257_v7  ;;  %v229_v16 = vadd.f32 %v498_v22, %v228_v10 }
  0xe0   :  { %v281_v14 = vsel %vm249_vm13, %v219_v0, %v265_v8  ;;  %290 = vst.msk [vmem:[%s583_s3 + $0x20] sm:$0xff] %vm285_vm1, %v273_v13  ;;  %v276_v17 = vsel %vm244_vm14, %v194_v5, %v260_v11  ;;  %vm243_vm0 = vcmp.ge.f32.partialorder %v189_v15, 0.0  ;;  %v259_v19 = vmul.f32 0.2, %v189_v15 }
  0xe1   :  { %298 = vst.msk [vmem:[%s583_s3 + $0x60] sm:$0xff] %vm285_vm1, %v281_v14  ;;  %v284_v18 = vsel %vm252_vm15, %v234_v6, %v268_v12  ;;  %293 = vst.msk [vmem:[%s583_s3 + $0x38] sm:$0xff] %vm285_vm1, %v276_v17  ;;  %vm251_vm2 = vcmp.ge.f32.partialorder %v229_v16, 0.0  ;;  %v267_v20 = vmul.f32 0.2, %v229_v16 }
  0xe2   :  { %301 = vst.msk [vmem:[%s583_s3 + $0x78] sm:$0xff] %vm285_vm1, %v284_v18  ;;  %v275_v21 = vsel %vm243_vm0, %v189_v15, %v259_v19 }
  0xe3   :  { %v283_v22 = vsel %vm251_vm2, %v229_v16, %v267_v20  ;;  %292 = vst.msk [vmem:[%s583_s3 + $0x30] sm:$0xff] %vm285_vm1, %v275_v21 }
  0xe4   :  { %300 = vst.msk [vmem:[%s583_s3 + $0x70] sm:$0xff] %vm285_vm1, %v283_v22 }

// kernel: discriminator_forward.6
= control target key start
LH: loop header
LB: loop body
LE: loop exit
PB: predicated region body
PF: predicated region fallthrough
CT: control target
= control target key end

     0   :  { %vm46_vm0 = vcmask 588800   ;;  %vm288_vm1 = vcmask 130048   ;;  %s607_s1 = inlined_call_operand.vmem [shape: f32[72,16], index: 1, kind: input, shape index: {}]   ;;  %s608_s0 = inlined_call_operand.vmem [shape: f32[128,72], index: 0, kind: input, shape index: {}]   ;;  %s609_s2 = inlined_call_operand.vmem [shape: f32[1,16], index: 2, kind: input, shape index: {}]   ;;  %s610_s3 = inlined_call_operand.vmem [shape: f32[128,16], index: 3, kind: output, shape index: {}]  }
   0x1   :  { %v38_v0 = vld [vmem:[%s607_s1 + $0x40] sm:$0xff]  ;;  %v37_v1 = vld [vmem:[%s607_s1 + $0x38] sm:$0xff]  ;;  %v36_v2 = vld [vmem:[%s607_s1 + $0x30] sm:$0xff] }
   0x2   :  { %351 = vmatprep.subr.mxu0 %v38_v0  ;;  %393 = vmatprep.subr.mxu1 %v38_v0  ;;  %v35_v3 = vld [vmem:[%s607_s1 + $0x28] sm:$0xff]  ;;  %v34_v4 = vld [vmem:[%s607_s1 + $0x20] sm:$0xff]  ;;  %v33_v5 = vld [vmem:[%s607_s1 + $0x18] sm:$0xff] }
   0x3   :  { %352 = vmatpush3.msra.mxu0 %v38_v0  ;;  %402 = vmatpush3.msra.mxu1 %v38_v0  ;;  %v32_v6 = vld [vmem:[%s607_s1 + $0x10] sm:$0xff]  ;;  %v31_v7 = vld [vmem:[%s607_s1 + $0x8] sm:$0xff]  ;;  %v30_v8 = vld [vmem:[%s607_s1] sm:$0xff] }
   0x4   :  { %353 = vmatprep.subr.mxu0 %v37_v1  ;;  %394 = vmatprep.subr.mxu1 %v37_v1  ;;  %v14_v9 = vld [vmem:[%s608_s0] sm:$0xff]  ;;  %v15_v11 = vld [vmem:[%s608_s0 + $0x8] sm:$0xff]  ;;  %v16_v13 = vld [vmem:[%s608_s0 + $0x10] sm:$0xff] }
   0x5   :  { %354 = vmatpush3.msra.mxu0 %v37_v1  ;;  %403 = vmatpush3.msra.mxu1 %v37_v1  ;;  %v22_v10 = vld [vmem:[%s608_s0 + $0x40] sm:$0xff]  ;;  %v23_v12 = vld [vmem:[%s608_s0 + $0x48] sm:$0xff]  ;;  %v24_v14 = vld [vmem:[%s608_s0 + $0x50] sm:$0xff] }
   0x6   :  { %355 = vmatprep.subr.mxu0 %v36_v2  ;;  %395 = vmatprep.subr.mxu1 %v36_v2  ;;  %v17_v15 = vld [vmem:[%s608_s0 + $0x18] sm:$0xff]  ;;  %v18_v17 = vld [vmem:[%s608_s0 + $0x20] sm:$0xff]  ;;  %v19_v19 = vld [vmem:[%s608_s0 + $0x28] sm:$0xff] }
   0x7   :  { %356 = vmatpush3.msra.mxu0 %v36_v2  ;;  %404 = vmatpush3.msra.mxu1 %v36_v2  ;;  %v25_v16 = vld [vmem:[%s608_s0 + $0x58] sm:$0xff]  ;;  %v26_v18 = vld [vmem:[%s608_s0 + $0x60] sm:$0xff]  ;;  %v27_v20 = vld [vmem:[%s608_s0 + $0x68] sm:$0xff] }
   0x8   :  { %357 = vmatprep.subr.mxu0 %v35_v3  ;;  %396 = vmatprep.subr.mxu1 %v35_v3  ;;  %v20_v21 = vld [vmem:[%s608_s0 + $0x30] sm:$0xff]  ;;  %v21_v23 = vld [vmem:[%s608_s0 + $0x38] sm:$0xff]  ;;  %v525_v25 = vld [vmem:[%s609_s2] ss:$0 sm:$0xff] }
   0x9   :  { %358 = vmatpush3.msra.mxu0 %v35_v3  ;;  %405 = vmatpush3.msra.mxu1 %v35_v3  ;;  %v28_v22 = vld [vmem:[%s608_s0 + $0x70] sm:$0xff]  ;;  %v29_v24 = vld [vmem:[%s608_s0 + $0x78] sm:$0xff] }
   0xa   :  { %359 = vmatprep.subr.mxu0 %v34_v4  ;;  %397 = vmatprep.subr.mxu1 %v34_v4 }
   0xb   :  { %360 = vmatpush3.msra.mxu0 %v34_v4  ;;  %406 = vmatpush3.msra.mxu1 %v34_v4 }
   0xc   :  { %361 = vmatprep.subr.mxu0 %v33_v5  ;;  %398 = vmatprep.subr.mxu1 %v33_v5 }
   0xd   :  { %362 = vmatpush3.msra.mxu0 %v33_v5  ;;  %407 = vmatpush3.msra.mxu1 %v33_v5 }
   0xe   :  { %363 = vmatprep.subr.mxu0 %v32_v6  ;;  %399 = vmatprep.subr.mxu1 %v32_v6 }
   0xf   :  { %364 = vmatpush3.msra.mxu0 %v32_v6  ;;  %408 = vmatpush3.msra.mxu1 %v32_v6 }
  0x10   :  { %365 = vmatprep.subr.mxu0 %v31_v7  ;;  %400 = vmatprep.subr.mxu1 %v31_v7 }
  0x11   :  { %366 = vmatpush3.msra.mxu0 %v31_v7  ;;  %409 = vmatpush3.msra.mxu1 %v31_v7 }
  0x12   :  { %367 = vmatprep.subr.mxu0 %v30_v8  ;;  %401 = vmatprep.subr.mxu1 %v30_v8 }
  0x13   :  { %368 = vmatpush3.msra.mxu0 %v30_v8  ;;  %410 = vmatpush3.msra.mxu1 %v30_v8 }
  0x14   :  { %369 = vmatprep.mubr.msk.f32.mxu0 %vm46_vm0, %v14_v9  ;;  %381 = vmatprep.mubr.msk.f32.mxu1 %vm46_vm0, %v22_v10 }
  0x15   :  { %370 = vmatmul.mubr.msk.f32.vlgmr.msra.gmra.mxu0 %vm46_vm0, %v15_v11  ;;  %382 = vmatmul.mubr.msk.f32.vlgmr.msra.gmra.mxu1 %vm46_vm0, %v23_v12 }
  0x16   :  { %372 = vmatprep.mubr.msk.f32.mxu0 %vm46_vm0, %v16_v13  ;;  %384 = vmatprep.mubr.msk.f32.mxu1 %vm46_vm0, %v24_v14 }
  0x19   :  { %373 = vmatmul.mubr.msk.f32.gmra.mxu0 %vm46_vm0, %v17_v15  ;;  %385 = vmatmul.mubr.msk.f32.gmra.mxu1 %vm46_vm0, %v25_v16 }
  0x1a   :  { %375 = vmatprep.mubr.msk.f32.mxu0 %vm46_vm0, %v18_v17  ;;  %387 = vmatprep.mubr.msk.f32.mxu1 %vm46_vm0, %v26_v18 }
  0x1d   :  { %376 = vmatmul.mubr.msk.f32.gmra.mxu0 %vm46_vm0, %v19_v19  ;;  %388 = vmatmul.mubr.msk.f32.gmra.mxu1 %vm46_vm0, %v27_v20 }
  0x1e   :  { %378 = vmatprep.mubr.msk.f32.mxu0 %vm46_vm0, %v20_v21  ;;  %390 = vmatprep.mubr.msk.f32.mxu1 %vm46_vm0, %v28_v22 }
  0x21   :  { %379 = vmatmul.mubr.msk.f32.gmra.mxu0 %vm46_vm0, %v21_v23  ;;  %391 = vmatmul.mubr.msk.f32.gmra.mxu1 %vm46_vm0, %v29_v24 }
  0xd5   :  { %v371_v26 = vpop.f32.mrf.mxu0  ;;  %v383_v27 = vpop.f32.mrf.mxu1 }
  0xd6   :  { %v167_v28 = vadd.f32 %v371_v26, %v525_v25  ;;  %v207_v29 = vadd.f32 %v383_v27, %v525_v25 }
  0xd7   :  { %v161_v30 = vpop.f32.mrf.mxu0  ;;  %v201_v31 = vpop.f32.mrf.mxu1 }
  0xd8   :  { %vm241_vm2 = vcmp.ge.f32.partialorder %v167_v28, 0.0  ;;  %v257_v32 = vmul.f32 0.2, %v167_v28  ;;  %vm249_vm3 = vcmp.ge.f32.partialorder %v207_v29, 0.0  ;;  %v265_v33 = vmul.f32 0.2, %v207_v29 }
  0xd9   :  { %v162_v34 = vadd.f32 %v525_v25, %v161_v30  ;;  %v202_v35 = vadd.f32 %v525_v25, %v201_v31  ;;  %v374_v36 = vpop.f32.mrf.mxu0  ;;  %v386_v37 = vpop.f32.mrf.mxu1 }
  0xda   :  { %v273_v38 = vsel %vm241_vm2, %v167_v28, %v257_v32  ;;  %v281_v39 = vsel %vm249_vm3, %v207_v29, %v265_v33  ;;  %v177_v40 = vadd.f32 %v374_v36, %v525_v25  ;;  %v217_v41 = vadd.f32 %v386_v37, %v525_v25 }
  0xdb   :  { %290 = vst.msk [vmem:[%s610_s3 + $0x8] sm:$0xff] %vm288_vm1, %v273_v38  ;;  %298 = vst.msk [vmem:[%s610_s3 + $0x48] sm:$0xff] %vm288_vm1, %v281_v39  ;;  %vm240_vm4 = vcmp.ge.f32.partialorder %v162_v34, 0.0  ;;  %v256_v42 = vmul.f32 0.2, %v162_v34  ;;  %vm248_vm5 = vcmp.ge.f32.partialorder %v202_v35, 0.0  ;;  %v171_v44 = vpop.f32.mrf.mxu0  ;;  %v211_v45 = vpop.f32.mrf.mxu1 }
  0xdc   :  { %v264_v43 = vmul.f32 0.2, %v202_v35  ;;  %vm243_vm6 = vcmp.ge.f32.partialorder %v177_v40, 0.0  ;;  %v259_v46 = vmul.f32 0.2, %v177_v40  ;;  %vm251_vm7 = vcmp.ge.f32.partialorder %v217_v41, 0.0 }
  0xdd   :  { %v267_v47 = vmul.f32 0.2, %v217_v41  ;;  %v272_v48 = vsel %vm240_vm4, %v162_v34, %v256_v42  ;;  %v172_v50 = vadd.f32 %v525_v25, %v171_v44  ;;  %v212_v51 = vadd.f32 %v525_v25, %v211_v45  ;;  %v377_v52 = vpop.f32.mrf.mxu0  ;;  %v389_v53 = vpop.f32.mrf.mxu1 }
  0xde   :  { %v280_v49 = vsel %vm248_vm5, %v202_v35, %v264_v43  ;;  %289 = vst.msk [vmem:[%s610_s3] sm:$0xff] %vm288_vm1, %v272_v48  ;;  %v275_v54 = vsel %vm243_vm6, %v177_v40, %v259_v46  ;;  %v187_v56 = vadd.f32 %v377_v52, %v525_v25  ;;  %v227_v57 = vadd.f32 %v389_v53, %v525_v25 }
  0xdf   :  { %297 = vst.msk [vmem:[%s610_s3 + $0x40] sm:$0xff] %vm288_vm1, %v280_v49  ;;  %v283_v55 = vsel %vm251_vm7, %v217_v41, %v267_v47  ;;  %292 = vst.msk [vmem:[%s610_s3 + $0x18] sm:$0xff] %vm288_vm1, %v275_v54  ;;  %vm242_vm8 = vcmp.ge.f32.partialorder %v172_v50, 0.0  ;;  %v258_v58 = vmul.f32 0.2, %v172_v50  ;;  %vm250_vm9 = vcmp.ge.f32.partialorder %v212_v51, 0.0  ;;  %v181_v60 = vpop.f32.mrf.mxu0  ;;  %v221_v61 = vpop.f32.mrf.mxu1 }
  0xe0   :  { %300 = vst.msk [vmem:[%s610_s3 + $0x58] sm:$0xff] %vm288_vm1, %v283_v55  ;;  %v266_v59 = vmul.f32 0.2, %v212_v51  ;;  %vm245_vm10 = vcmp.ge.f32.partialorder %v187_v56, 0.0  ;;  %v261_v62 = vmul.f32 0.2, %v187_v56  ;;  %v182_v2 = vadd.f32 %v525_v25, %v181_v60 }
  0xe1   :  { %vm253_vm11 = vcmp.ge.f32.partialorder %v227_v57, 0.0  ;;  %v269_v63 = vmul.f32 0.2, %v227_v57  ;;  %v274_v0 = vsel %vm242_vm8, %v172_v50, %v258_v58  ;;  %v222_v3 = vadd.f32 %v525_v25, %v221_v61  ;;  %v380_v4 = vpop.f32.mrf.mxu0  ;;  %v392_v5 = vpop.f32.mrf.mxu1 }
  0xe2   :  { %v282_v1 = vsel %vm250_vm9, %v212_v51, %v266_v59  ;;  %291 = vst.msk [vmem:[%s610_s3 + $0x10] sm:$0xff] %vm288_vm1, %v274_v0  ;;  %v277_v6 = vsel %vm245_vm10, %v187_v56, %v261_v62  ;;  %v197_v8 = vadd.f32 %v380_v4, %v525_v25  ;;  %v237_v9 = vadd.f32 %v392_v5, %v525_v25 }
  0xe3   :  { %299 = vst.msk [vmem:[%s610_s3 + $0x50] sm:$0xff] %vm288_vm1, %v282_v1  ;;  %v285_v7 = vsel %vm253_vm11, %v227_v57, %v269_v63  ;;  %294 = vst.msk [vmem:[%s610_s3 + $0x28] sm:$0xff] %vm288_vm1, %v277_v6  ;;  %vm244_vm12 = vcmp.ge.f32.partialorder %v182_v2, 0.0  ;;  %v260_v10 = vmul.f32 0.2, %v182_v2  ;;  %vm252_vm13 = vcmp.ge.f32.partialorder %v222_v3, 0.0  ;;  %v191_v12 = vpop.f32.mrf.mxu0  ;;  %v231_v13 = vpop.f32.mrf.mxu1 }
  0xe4   :  { %302 = vst.msk [vmem:[%s610_s3 + $0x68] sm:$0xff] %vm288_vm1, %v285_v7  ;;  %v268_v11 = vmul.f32 0.2, %v222_v3  ;;  %vm247_vm14 = vcmp.ge.f32.partialorder %v197_v8, 0.0  ;;  %v263_v14 = vmul.f32 0.2, %v197_v8  ;;  %v192_v18 = vadd.f32 %v525_v25, %v191_v12 }
  0xe5   :  { %vm255_vm15 = vcmp.ge.f32.partialorder %v237_v9, 0.0  ;;  %v271_v15 = vmul.f32 0.2, %v237_v9  ;;  %v276_v16 = vsel %vm244_vm12, %v182_v2, %v260_v10  ;;  %v232_v19 = vadd.f32 %v525_v25, %v231_v13 }
  0xe6   :  { %v284_v17 = vsel %vm252_vm13, %v222_v3, %v268_v11  ;;  %293 = vst.msk [vmem:[%s610_s3 + $0x20] sm:$0xff] %vm288_vm1, %v276_v16  ;;  %v279_v20 = vsel %vm247_vm14, %v197_v8, %v263_v14  ;;  %vm246_vm0 = vcmp.ge.f32.partialorder %v192_v18, 0.0  ;;  %v262_v22 = vmul.f32 0.2, %v192_v18 }
  0xe7   :  { %301 = vst.msk [vmem:[%s610_s3 + $0x60] sm:$0xff] %vm288_vm1, %v284_v17  ;;  %v287_v21 = vsel %vm255_vm15, %v237_v9, %v271_v15  ;;  %296 = vst.msk [vmem:[%s610_s3 + $0x38] sm:$0xff] %vm288_vm1, %v279_v20  ;;  %vm254_vm2 = vcmp.ge.f32.partialorder %v232_v19, 0.0  ;;  %v270_v23 = vmul.f32 0.2, %v232_v19 }
  0xe8   :  { %304 = vst.msk [vmem:[%s610_s3 + $0x78] sm:$0xff] %vm288_vm1, %v287_v21  ;;  %v278_v24 = vsel %vm246_vm0, %v192_v18, %v262_v22 }
  0xe9   :  { %v286_v25 = vsel %vm254_vm2, %v232_v19, %v270_v23  ;;  %295 = vst.msk [vmem:[%s610_s3 + $0x30] sm:$0xff] %vm288_vm1, %v278_v24 }
  0xea   :  { %303 = vst.msk [vmem:[%s610_s3 + $0x70] sm:$0xff] %vm288_vm1, %v286_v25 }

// kernel: discriminator_forward.7
= control target key start
LH: loop header
LB: loop body
LE: loop exit
PB: predicated region body
PF: predicated region fallthrough
CT: control target
= control target key end

     0   :  { %v339_v0 = vmov 0.0   ;;  %vm71_vm0 = vcmask 130048   ;;  %s629_s1 = inlined_call_operand.vmem [shape: f32[144,16], index: 1, kind: input, shape index: {}]   ;;  %s630_s0 = inlined_call_operand.vmem [shape: f32[128,144], index: 0, kind: input, shape index: {}]   ;;  %s631_s2 = inlined_call_operand.vmem [shape: f32[1,16], index: 2, kind: input, shape index: {}]   ;;  %s632_s3 = inlined_call_operand.vmem [shape: f32[128,16], index: 3, kind: output, shape index: {}]  }
   0x1   :  { %120 = vmatprep.subr.mxu0 %v339_v0  ;;  %302 = vmatprep.subr.mxu1 %v339_v0  ;;  %v61_v1 = vld [vmem:[%s629_s1 + $0x78] sm:$0xff]  ;;  %v60_v2 = vld [vmem:[%s629_s1 + $0x70] sm:$0xff]  ;;  %v59_v3 = vld [vmem:[%s629_s1 + $0x68] sm:$0xff] }
   0x2   :  { %121 = vmatpush1.msra.mxu0 %v61_v1  ;;  %320 = vmatpush1.msra.mxu1 %v61_v1  ;;  %v58_v4 = vld [vmem:[%s629_s1 + $0x60] sm:$0xff]  ;;  %v57_v5 = vld [vmem:[%s629_s1 + $0x58] sm:$0xff]  ;;  %v56_v6 = vld [vmem:[%s629_s1 + $0x50] sm:$0xff] }
   0x3   :  { %122 = vmatprep.subr.mxu0 %v339_v0  ;;  %303 = vmatprep.subr.mxu1 %v339_v0  ;;  %v55_v7 = vld [vmem:[%s629_s1 + $0x48] sm:$0xff]  ;;  %v54_v8 = vld [vmem:[%s629_s1 + $0x40] sm:$0xff]  ;;  %v53_v9 = vld [vmem:[%s629_s1 + $0x38] sm:$0xff] }
   0x4   :  { %123 = vmatpush1.msra.mxu0 %v60_v2  ;;  %321 = vmatpush1.msra.mxu1 %v60_v2  ;;  %v52_v10 = vld [vmem:[%s629_s1 + $0x30] sm:$0xff]  ;;  %v51_v11 = vld [vmem:[%s629_s1 + $0x28] sm:$0xff]  ;;  %v50_v12 = vld [vmem:[%s629_s1 + $0x20] sm:$0xff] }
   0x5   :  { %124 = vmatprep.subr.mxu0 %v339_v0  ;;  %304 = vmatprep.subr.mxu1 %v339_v0  ;;  %v49_v13 = vld [vmem:[%s629_s1 + $0x18] sm:$0xff]  ;;  %v48_v14 = vld [vmem:[%s629_s1 + $0x10] sm:$0xff]  ;;  %v47_v15 = vld [vmem:[%s629_s1 + $0x8] sm:$0xff] }
   0x6   :  { %125 = vmatpush1.msra.mxu0 %v59_v3  ;;  %322 = vmatpush1.msra.mxu1 %v59_v3  ;;  %v46_v16 = vld [vmem:[%s629_s1] sm:$0xff]  ;;  %v63_v17 = vld [vmem:[%s629_s1 + $0x88] sm:$0xff]  ;;  %v17_v23 = vld [vmem:[%s630_s0 + $0x18] sm:$0xff] }
   0x7   :  { %126 = vmatprep.subr.mxu0 %v339_v0  ;;  %305 = vmatprep.subr.mxu1 %v339_v0  ;;  %v62_v18 = vld [vmem:[%s629_s1 + $0x80] sm:$0xff]  ;;  %v15_v19 = vld [vmem:[%s630_s0 + $0x8] sm:$0xff]  ;;  %v33_v24 = vld [vmem:[%s630_s0 + $0x98] sm:$0xff] }
   0x8   :  { %127 = vmatpush1.msra.mxu0 %v58_v4  ;;  %323 = vmatpush1.msra.mxu1 %v58_v4  ;;  %v31_v20 = vld [vmem:[%s630_s0 + $0x88] sm:$0xff]  ;;  %v14_v21 = vld [vmem:[%s630_s0] sm:$0xff]  ;;  %v16_v25 = vld [vmem:[%s630_s0 + $0x10] sm:$0xff] }
   0x9   :  { %128 = vmatprep.subr.mxu0 %v339_v0  ;;  %306 = vmatprep.subr.mxu1 %v339_v0  ;;  %v30_v22 = vld [vmem:[%s630_s0 + $0x80] sm:$0xff]  ;;  %v32_v26 = vld [vmem:[%s630_s0 + $0x90] sm:$0xff]  ;;  %v19_v27 = vld [vmem:[%s630_s0 + $0x28] sm:$0xff] }
   0xa   :  { %129 = vmatpush1.msra.mxu0 %v57_v5  ;;  %324 = vmatpush1.msra.mxu1 %v57_v5  ;;  %v35_v28 = vld [vmem:[%s630_s0 + $0xa8] sm:$0xff]  ;;  %v18_v29 = vld [vmem:[%s630_s0 + $0x20] sm:$0xff]  ;;  %v21_v31 = vld [vmem:[%s630_s0 + $0x38] sm:$0xff] }
   0xb   :  { %130 = vmatprep.subr.mxu0 %v339_v0  ;;  %307 = vmatprep.subr.mxu1 %v339_v0  ;;  %v34_v30 = vld [vmem:[%s630_s0 + $0xa0] sm:$0xff]  ;;  %v37_v32 = vld [vmem:[%s630_s0 + $0xb8] sm:$0xff]  ;;  %v20_v33 = vld [vmem:[%s630_s0 + $0x30] sm:$0xff] }
   0xc   :  { %131 = vmatpush1.msra.mxu0 %v56_v6  ;;  %325 = vmatpush1.msra.mxu1 %v56_v6  ;;  %v36_v34 = vld [vmem:[%s630_s0 + $0xb0] sm:$0xff]  ;;  %v23_v35 = vld [vmem:[%s630_s0 + $0x48] sm:$0xff]  ;;  %v22_v37 = vld [vmem:[%s630_s0 + $0x40] sm:$0xff] }
   0xd   :  { %132 = vmatprep.subr.mxu0 %v339_v0  ;;  %308 = vmatprep.subr.mxu1 %v339_v0  ;;  %v39_v36 = vld [vmem:[%s630_s0 + $0xc8] sm:$0xff]  ;;  %v38_v38 = vld [vmem:[%s630_s0 + $0xc0] sm:$0xff]  ;;  %v25_v39 = vld [vmem:[%s630_s0 + $0x58] sm:$0xff] }
   0xe   :  { %133 = vmatpush1.msra.mxu0 %v55_v7  ;;  %326 = vmatpush1.msra.mxu1 %v55_v7  ;;  %v41_v40 = vld [vmem:[%s630_s0 + $0xd8] sm:$0xff]  ;;  %v24_v41 = vld [vmem:[%s630_s0 + $0x50] sm:$0xff]  ;;  %v27_v43 = vld [vmem:[%s630_s0 + $0x68] sm:$0xff] }
   0xf   :  { %134 = vmatprep.subr.mxu0 %v339_v0  ;;  %309 = vmatprep.subr.mxu1 %v339_v0  ;;  %v40_v42 = vld [vmem:[%s630_s0 + $0xd0] sm:$0xff]  ;;  %v43_v44 = vld [vmem:[%s630_s0 + $0xe8] sm:$0xff]  ;;  %v26_v45 = vld [vmem:[%s630_s0 + $0x60] sm:$0xff] }
  0x10   :  { %135 = vmatpush1.msra.mxu0 %v54_v8  ;;  %327 = vmatpush1.msra.mxu1 %v54_v8  ;;  %v42_v46 = vld [vmem:[%s630_s0 + $0xe0] sm:$0xff]  ;;  %v29_v47 = vld [vmem:[%s630_s0 + $0x78] sm:$0xff]  ;;  %v28_v49 = vld [vmem:[%s630_s0 + $0x70] sm:$0xff] }
  0x11   :  { %136 = vmatprep.subr.mxu0 %v339_v0  ;;  %310 = vmatprep.subr.mxu1 %v339_v0  ;;  %v45_v48 = vld [vmem:[%s630_s0 + $0xf8] sm:$0xff]  ;;  %v44_v50 = vld [vmem:[%s630_s0 + $0xf0] sm:$0xff]  ;;  %v285_v51 = vld [vmem:[%s631_s2] ss:$0 sm:$0xff] }
  0x12   :  { %137 = vmatpush1.msra.mxu0 %v53_v9  ;;  %328 = vmatpush1.msra.mxu1 %v53_v9 }
  0x13   :  { %138 = vmatprep.subr.mxu0 %v339_v0  ;;  %311 = vmatprep.subr.mxu1 %v339_v0 }
  0x14   :  { %139 = vmatpush1.msra.mxu0 %v52_v10  ;;  %329 = vmatpush1.msra.mxu1 %v52_v10 }
  0x15   :  { %140 = vmatprep.subr.mxu0 %v339_v0  ;;  %312 = vmatprep.subr.mxu1 %v339_v0 }
  0x16   :  { %141 = vmatpush1.msra.mxu0 %v51_v11  ;;  %330 = vmatpush1.msra.mxu1 %v51_v11 }
  0x17   :  { %142 = vmatprep.subr.mxu0 %v339_v0  ;;  %313 = vmatprep.subr.mxu1 %v339_v0 }
  0x18   :  { %143 = vmatpush1.msra.mxu0 %v50_v12  ;;  %331 = vmatpush1.msra.mxu1 %v50_v12 }
  0x19   :  { %144 = vmatprep.subr.mxu0 %v339_v0  ;;  %314 = vmatprep.subr.mxu1 %v339_v0 }
  0x1a   :  { %145 = vmatpush1.msra.mxu0 %v49_v13  ;;  %332 = vmatpush1.msra.mxu1 %v49_v13 }
  0x1b   :  { %146 = vmatprep.subr.mxu0 %v339_v0  ;;  %315 = vmatprep.subr.mxu1 %v339_v0 }
  0x1c   :  { %147 = vmatpush1.msra.mxu0 %v48_v14  ;;  %333 = vmatpush1.msra.mxu1 %v48_v14 }
  0x1d   :  { %148 = vmatprep.subr.mxu0 %v339_v0  ;;  %316 = vmatprep.subr.mxu1 %v339_v0 }
  0x1e   :  { %149 = vmatpush1.msra.mxu0 %v47_v15  ;;  %334 = vmatpush1.msra.mxu1 %v47_v15 }
  0x1f   :  { %150 = vmatprep.subr.mxu0 %v339_v0  ;;  %317 = vmatprep.subr.mxu1 %v339_v0 }
  0x20   :  { %151 = vmatpush1.msra.mxu0 %v46_v16  ;;  %335 = vmatpush1.msra.mxu1 %v46_v16 }
  0x21   :  { %180 = vmatprep.subr.mxu0 %v339_v0  ;;  %318 = vmatprep.subr.mxu1 %v339_v0 }
  0x22   :  { %181 = vmatpush2.msra.mxu0 %v63_v17  ;;  %336 = vmatpush2.msra.mxu1 %v63_v17 }
  0x23   :  { %182 = vmatprep.subr.mxu0 %v339_v0  ;;  %319 = vmatprep.subr.mxu1 %v339_v0 }
  0x24   :  { %183 = vmatpush2.msra.mxu0 %v62_v18  ;;  %337 = vmatpush2.msra.mxu1 %v62_v18 }
  0x25   :  { %286 = vmatprep.mubr.msk.f32.mxu0 %vm71_vm0, %v15_v19  ;;  %294 = vmatprep.mubr.msk.f32.mxu1 %vm71_vm0, %v31_v20 }
  0x26   :  { %185 = vmatmul.mubr.f32.vlgmr.msra.gmra.mxu0 %v14_v21  ;;  %225 = vmatmul.mubr.f32.vlgmr.msra.gmra.mxu1 %v30_v22 }
  0x27   :  { %287 = vmatprep.mubr.msk.f32.mxu0 %vm71_vm0, %v17_v23  ;;  %295 = vmatprep.mubr.msk.f32.mxu1 %vm71_vm0, %v33_v24 }
  0x2a   :  { %190 = vmatmul.mubr.f32.gmra.mxu0 %v16_v25  ;;  %230 = vmatmul.mubr.f32.gmra.mxu1 %v32_v26 }
  0x2b   :  { %288 = vmatprep.mubr.msk.f32.mxu0 %vm71_vm0, %v19_v27  ;;  %296 = vmatprep.mubr.msk.f32.mxu1 %vm71_vm0, %v35_v28 }
  0x2e   :  { %195 = vmatmul.mubr.f32.gmra.mxu0 %v18_v29  ;;  %235 = vmatmul.mubr.f32.gmra.mxu1 %v34_v30 }
  0x2f   :  { %289 = vmatprep.mubr.msk.f32.mxu0 %vm71_vm0, %v21_v31  ;;  %297 = vmatprep.mubr.msk.f32.mxu1 %vm71_vm0, %v37_v32 }
  0x32   :  { %200 = vmatmul.mubr.f32.gmra.mxu0 %v20_v33  ;;  %240 = vmatmul.mubr.f32.gmra.mxu1 %v36_v34 }
  0x33   :  { %290 = vmatprep.mubr.msk.f32.mxu0 %vm71_vm0, %v23_v35  ;;  %298 = vmatprep.mubr.msk.f32.mxu1 %vm71_vm0, %v39_v36 }
  0x36   :  { %205 = vmatmul.mubr.f32.gmra.mxu0 %v22_v37  ;;  %245 = vmatmul.mubr.f32.gmra.mxu1 %v38_v38 }
  0x37   :  { %291 = vmatprep.mubr.msk.f32.mxu0 %vm71_vm0, %v25_v39  ;;  %299 = vmatprep.mubr.msk.f32.mxu1 %vm71_vm0, %v41_v40 }
  0x3a   :  { %210 = vmatmul.mubr.f32.gmra.mxu0 %v24_v41  ;;  %250 = vmatmul.mubr.f32.gmra.mxu1 %v40_v42 }
  0x3b   :  { %292 = vmatprep.mubr.msk.f32.mxu0 %vm71_vm0, %v27_v43  ;;  %300 = vmatprep.mubr.msk.f32.mxu1 %vm71_vm0, %v43_v44 }
  0x3e   :  { %215 = vmatmul.mubr.f32.gmra.mxu0 %v26_v45  ;;  %255 = vmatmul.mubr.f32.gmra.mxu1 %v42_v46 }
  0x3f   :  { %293 = vmatprep.mubr.msk.f32.mxu0 %vm71_vm0, %v29_v47  ;;  %301 = vmatprep.mubr.msk.f32.mxu1 %vm71_vm0, %v45_v48 }
  0x42   :  { %220 = vmatmul.mubr.f32.gmra.mxu0 %v28_v49  ;;  %260 = vmatmul.mubr.f32.gmra.mxu1 %v44_v50 }
  0xe6   :  { %v186_v52 = vpop.f32.mrf.mxu0  ;;  %v226_v53 = vpop.f32.mrf.mxu1 }
  0xe7   :  { %v187_v54 = vadd.f32 %v285_v51, %v186_v52  ;;  %v227_v55 = vadd.f32 %v285_v51, %v226_v53 }
  0xe8   :  { %v188_v56 = vpop.f32.mrf.mxu0  ;;  %v228_v57 = vpop.f32.mrf.mxu1 }
  0xe9   :  { %265 = vst.msk [vmem:[%s632_s3] sm:$0xff] %vm71_vm0, %v187_v54  ;;  %273 = vst.msk [vmem:[%s632_s3 + $0x40] sm:$0xff] %vm71_vm0, %v227_v55 }
  0xea   :  { %v191_v58 = vpop.f32.mrf.mxu0  ;;  %v231_v59 = vpop.f32.mrf.mxu1 }
  0xeb   :  { %v192_v60 = vadd.f32 %v285_v51, %v191_v58  ;;  %v232_v61 = vadd.f32 %v285_v51, %v231_v59 }
  0xec   :  { %v193_v62 = vpop.f32.mrf.mxu0  ;;  %v233_v63 = vpop.f32.mrf.mxu1 }
  0xed   :  { %266 = vst.msk [vmem:[%s632_s3 + $0x8] sm:$0xff] %vm71_vm0, %v192_v60  ;;  %274 = vst.msk [vmem:[%s632_s3 + $0x48] sm:$0xff] %vm71_vm0, %v232_v61 }
  0xee   :  { %v196_v0 = vpop.f32.mrf.mxu0  ;;  %v236_v1 = vpop.f32.mrf.mxu1 }
  0xef   :  { %v197_v2 = vadd.f32 %v285_v51, %v196_v0  ;;  %v237_v3 = vadd.f32 %v285_v51, %v236_v1 }
  0xf0   :  { %v198_v4 = vpop.f32.mrf.mxu0  ;;  %v238_v5 = vpop.f32.mrf.mxu1 }
  0xf1   :  { %267 = vst.msk [vmem:[%s632_s3 + $0x10] sm:$0xff] %vm71_vm0, %v197_v2  ;;  %275 = vst.msk [vmem:[%s632_s3 + $0x50] sm:$0xff] %vm71_vm0, %v237_v3 }
  0xf2   :  { %v201_v6 = vpop.f32.mrf.mxu0  ;;  %v241_v7 = vpop.f32.mrf.mxu1 }
  0xf3   :  { %v202_v8 = vadd.f32 %v285_v51, %v201_v6  ;;  %v242_v9 = vadd.f32 %v285_v51, %v241_v7 }
  0xf4   :  { %v203_v10 = vpop.f32.mrf.mxu0  ;;  %v243_v11 = vpop.f32.mrf.mxu1 }
  0xf5   :  { %268 = vst.msk [vmem:[%s632_s3 + $0x18] sm:$0xff] %vm71_vm0, %v202_v8  ;;  %276 = vst.msk [vmem:[%s632_s3 + $0x58] sm:$0xff] %vm71_vm0, %v242_v9 }
  0xf6   :  { %v206_v12 = vpop.f32.mrf.mxu0  ;;  %v246_v13 = vpop.f32.mrf.mxu1 }
  0xf7   :  { %v207_v14 = vadd.f32 %v285_v51, %v206_v12  ;;  %v247_v15 = vadd.f32 %v285_v51, %v246_v13 }
  0xf8   :  { %v208_v16 = vpop.f32.mrf.mxu0  ;;  %v248_v17 = vpop.f32.mrf.mxu1 }
  0xf9   :  { %269 = vst.msk [vmem:[%s632_s3 + $0x20] sm:$0xff] %vm71_vm0, %v207_v14  ;;  %277 = vst.msk [vmem:[%s632_s3 + $0x60] sm:$0xff] %vm71_vm0, %v247_v15 }
  0xfa   :  { %v211_v18 = vpop.f32.mrf.mxu0  ;;  %v251_v19 = vpop.f32.mrf.mxu1 }
  0xfb   :  { %v212_v20 = vadd.f32 %v285_v51, %v211_v18  ;;  %v252_v21 = vadd.f32 %v285_v51, %v251_v19 }
  0xfc   :  { %v213_v22 = vpop.f32.mrf.mxu0  ;;  %v253_v23 = vpop.f32.mrf.mxu1 }
  0xfd   :  { %270 = vst.msk [vmem:[%s632_s3 + $0x28] sm:$0xff] %vm71_vm0, %v212_v20  ;;  %278 = vst.msk [vmem:[%s632_s3 + $0x68] sm:$0xff] %vm71_vm0, %v252_v21 }
  0xfe   :  { %v216_v24 = vpop.f32.mrf.mxu0  ;;  %v256_v25 = vpop.f32.mrf.mxu1 }
  0xff   :  { %v217_v26 = vadd.f32 %v285_v51, %v216_v24  ;;  %v257_v27 = vadd.f32 %v285_v51, %v256_v25 }
 0x100   :  { %v218_v28 = vpop.f32.mrf.mxu0  ;;  %v258_v29 = vpop.f32.mrf.mxu1 }
 0x101   :  { %271 = vst.msk [vmem:[%s632_s3 + $0x30] sm:$0xff] %vm71_vm0, %v217_v26  ;;  %279 = vst.msk [vmem:[%s632_s3 + $0x70] sm:$0xff] %vm71_vm0, %v257_v27 }
 0x102   :  { %v221_v30 = vpop.f32.mrf.mxu0  ;;  %v261_v31 = vpop.f32.mrf.mxu1 }
 0x103   :  { %v222_v32 = vadd.f32 %v285_v51, %v221_v30  ;;  %v262_v33 = vadd.f32 %v285_v51, %v261_v31 }
 0x104   :  { %v223_v34 = vpop.f32.mrf.mxu0  ;;  %v263_v35 = vpop.f32.mrf.mxu1 }
 0x105   :  { %272 = vst.msk [vmem:[%s632_s3 + $0x38] sm:$0xff] %vm71_vm0, %v222_v32  ;;  %280 = vst.msk [vmem:[%s632_s3 + $0x78] sm:$0xff] %vm71_vm0, %v262_v33 }

// kernel: discriminator_forward.8
= control target key start
LH: loop header
LB: loop body
LE: loop exit
PB: predicated region body
PF: predicated region fallthrough
CT: control target
= control target key end

     0   :  { %vm38_vm0 = vcmask 64512   ;;  %vm184_vm1 = vcmask 130048   ;;  %s335_s1 = inlined_call_operand.vmem [shape: f32[8,16], index: 1, kind: input, shape index: {}]   ;;  %s336_s0 = inlined_call_operand.vmem [shape: f32[32,8], index: 0, kind: input, shape index: {}]   ;;  %s337_s3 = inlined_call_operand.vmem [shape: f32[32,16], index: 3, kind: input, shape index: {}]   ;;  %s338_s4 = inlined_call_operand.vmem [shape: f32[32,16], index: 4, kind: input, shape index: {}]   ;;  %s339_s5 = inlined_call_operand.vmem [shape: f32[32,16], index: 5, kind: input, shape index: {}]   ;;  %s340_s6 = inlined_call_operand.vmem [shape: f32[32,16], index: 6, kind: input, shape index: {}]   ;;  %s341_s2 = inlined_call_operand.vmem [shape: f32[1,16], index: 2, kind: input, shape index: {}]   ;;  %s342_s7 = inlined_call_operand.vmem [shape: f32[32,16], index: 7, kind: output, shape index: {}]  }
   0x1   :  { %v30_v0 = vld [vmem:[%s335_s1] sm:$0xff]  ;;  %v28_v2 = vld [vmem:[%s336_s0 + $0x10] sm:$0xff]  ;;  %v27_v3 = vld [vmem:[%s336_s0 + $0x8] sm:$0xff] }
   0x2   :  { %v26_v1 = vld [vmem:[%s336_s0] sm:$0xff]  ;;  %203 = vmatprep.subr.mxu0 %v30_v0  ;;  %211 = vmatprep.subr.mxu1 %v30_v0  ;;  %v29_v4 = vld [vmem:[%s336_s0 + $0x18] sm:$0xff]  ;;  %v137_v5 = vld [vmem:[%s337_s3 + $0x8] sm:$0xff] }
   0x3   :  { %204 = vmatpush3.msra.mxu0 %v30_v0  ;;  %212 = vmatpush3.msra.mxu1 %v30_v0  ;;  %v141_v6 = vld [vmem:[%s338_s4 + $0x8] sm:$0xff]  ;;  %v139_v7 = vld [vmem:[%s337_s3 + $0x18] sm:$0xff]  ;;  %v136_v9 = vld [vmem:[%s337_s3] sm:$0xff] }
   0x4   :  { %205 = vmatprep.mubr.msk.f32.mxu0 %vm38_vm0, %v26_v1  ;;  %208 = vmatprep.mubr.msk.f32.mxu1 %vm38_vm0, %v28_v2  ;;  %v143_v8 = vld [vmem:[%s338_s4 + $0x18] sm:$0xff]  ;;  %v145_v10 = vadd.f32 %v141_v6, %v137_v5  ;;  %v140_v12 = vld [vmem:[%s338_s4] sm:$0xff]  ;;  %v138_v13 = vld [vmem:[%s337_s3 + $0x10] sm:$0xff] }
   0x5   :  { %206 = vmatmul.mubr.msk.f32.vlgmr.msra.gmra.mxu0 %vm38_vm0, %v27_v3  ;;  %209 = vmatmul.mubr.msk.f32.vlgmr.msra.gmra.mxu1 %vm38_vm0, %v29_v4  ;;  %v147_v11 = vadd.f32 %v143_v8, %v139_v7  ;;  %v142_v14 = vld [vmem:[%s338_s4 + $0x10] sm:$0xff]  ;;  %v149_v15 = vld [vmem:[%s339_s5 + $0x8] sm:$0xff]  ;;  %v151_v16 = vld [vmem:[%s339_s5 + $0x18] sm:$0xff]  ;;  %v144_v17 = vadd.f32 %v140_v12, %v136_v9 }
   0x6   :  { %v146_v18 = vadd.f32 %v142_v14, %v138_v13  ;;  %v153_v19 = vadd.f32 %v149_v15, %v145_v10  ;;  %v148_v21 = vld [vmem:[%s339_s5] sm:$0xff]  ;;  %v150_v22 = vld [vmem:[%s339_s5 + $0x10] sm:$0xff]  ;;  %v157_v23 = vld [vmem:[%s340_s6 + $0x8] sm:$0xff] }
   0x7   :  { %v155_v20 = vadd.f32 %v151_v16, %v147_v11  ;;  %v159_v24 = vld [vmem:[%s340_s6 + $0x18] sm:$0xff]  ;;  %v152_v25 = vadd.f32 %v148_v21, %v144_v17  ;;  %v156_v29 = vld [vmem:[%s340_s6] sm:$0xff]  ;;  %v158_v30 = vld [vmem:[%s340_s6 + $0x10] sm:$0xff] }
   0x8   :  { %v154_v26 = vadd.f32 %v150_v22, %v146_v18  ;;  %v161_v27 = vadd.f32 %v157_v23, %v153_v19  ;;  %v193_v31 = vld [vmem:[%s341_s2] ss:$0 sm:$0xff] }
   0x9   :  { %v163_v28 = vadd.f32 %v159_v24, %v155_v20  ;;  %v160_v32 = vadd.f32 %v156_v29, %v152_v25 }
   0xa   :  { %v162_v33 = vadd.f32 %v158_v30, %v154_v26  ;;  %v165_v34 = vmul.f32 0.25, %v161_v27 }
   0xb   :  { %v167_v35 = vmul.f32 0.25, %v163_v28  ;;  %v164_v41 = vmul.f32 0.25, %v160_v32 }
   0xc   :  { %v166_v43 = vmul.f32 0.25, %v162_v33 }
  0xc5   :  { %v207_v36 = vpop.f32.mrf.mxu0  ;;  %v210_v37 = vpop.f32.mrf.mxu1 }
  0xc6   :  { %v123_v38 = vadd.f32 %v207_v36, %v193_v31  ;;  %v133_v39 = vadd.f32 %v210_v37, %v193_v31 }
  0xc7   :  { %v117_v40 = vpop.f32.mrf.mxu0  ;;  %v127_v42 = vpop.f32.mrf.mxu1 }
  0xc8   :  { %v169_v44 = vadd.f32 %v165_v34, %v123_v38  ;;  %v171_v45 = vadd.f32 %v167_v35, %v133_v39  ;;  %v118_v46 = vadd.f32 %v193_v31, %v117_v40  ;;  %v128_v47 = vadd.f32 %v193_v31, %v127_v42 }
  0xca   :  { %vm173_vm2 = vcmp.ge.f32.partialorder %v169_v44, 0.0  ;;  %v177_v48 = vmul.f32 0.04, %v169_v44  ;;  %vm175_vm3 = vcmp.ge.f32.partialorder %v171_v45, 0.0  ;;  %v179_v49 = vmul.f32 0.04, %v171_v45 }
  0xcb   :  { %v168_v50 = vadd.f32 %v164_v41, %v118_v46  ;;  %v170_v51 = vadd.f32 %v166_v43, %v128_v47 }
  0xcc   :  { %v181_v52 = vsel %vm173_vm2, %v169_v44, %v177_v48  ;;  %v183_v53 = vsel %vm175_vm3, %v171_v45, %v179_v49 }
  0xcd   :  { %186 = vst.msk [vmem:[%s342_s7 + $0x8] sm:$0xff] %vm184_vm1, %v181_v52  ;;  %188 = vst.msk [vmem:[%s342_s7 + $0x18] sm:$0xff] %vm184_vm1, %v183_v53  ;;  %vm172_vm4 = vcmp.ge.f32.partialorder %v168_v50, 0.0  ;;  %v176_v54 = vmul.f32 0.04, %v168_v50  ;;  %vm174_vm5 = vcmp.ge.f32.partialorder %v170_v51, 0.0 }
  0xce   :  { %v178_v55 = vmul.f32 0.04, %v170_v51 }
  0xcf   :  { %v180_v56 = vsel %vm172_vm4, %v168_v50, %v176_v54 }
  0xd0   :  { %v182_v57 = vsel %vm174_vm5, %v170_v51, %v178_v55  ;;  %185 = vst.msk [vmem:[%s342_s7] sm:$0xff] %vm184_vm1, %v180_v56 }
  0xd1   :  { %187 = vst.msk [vmem:[%s342_s7 + $0x10] sm:$0xff] %vm184_vm1, %v182_v57 }

// kernel: discriminator_forward.9
= control target key start
LH: loop header
LB: loop body
LE: loop exit
PB: predicated region body
PF: predicated region fallthrough
CT: control target
= control target key end

     0   :  { %vm127_vm0 = vcmask 7168   ;;  %s297_s1 = inlined_call_operand.vmem [shape: f32[256,1], index: 1, kind: input, shape index: {}]   ;;  %s298_s0 = inlined_call_operand.vmem [shape: f32[8,256], index: 0, kind: input, shape index: {}]   ;;  %s299_s2 = inlined_call_operand.<no memory space> [shape: f32[1,1], index: 2, kind: input, shape index: {}]   ;;  %s300_s3 = inlined_call_operand.vmem [shape: f32[8,1], index: 3, kind: output, shape index: {}]  }
   0x1   :  { %v49_v0 = vld [vmem:[%s297_s1 + $0xf8] sm:$0xff]  ;;  %v48_v2 = vld [vmem:[%s297_s1 + $0xf0] sm:$0xff]  ;;  %v47_v4 = vld [vmem:[%s297_s1 + $0xe8] sm:$0xff]  ;;  %v8_v34 = vstv %s299_s2 }
   0x2   :  { %v33_v1 = vld [vmem:[%s297_s1 + $0x78] sm:$0xff]  ;;  %134 = vmatprep.subr.mxu0 %v49_v0  ;;  %v32_v3 = vld [vmem:[%s297_s1 + $0x70] sm:$0xff]  ;;  %v31_v5 = vld [vmem:[%s297_s1 + $0x68] sm:$0xff]  ;;  %9 = vst [vmem:[#allocation2] sm:$0x1] %v8_v34 }
   0x3   :  { %135 = vmatpush3.msra.mxu0 %v33_v1  ;;  %v46_v6 = vld [vmem:[%s297_s1 + $0xe0] sm:$0xff]  ;;  %v45_v8 = vld [vmem:[%s297_s1 + $0xd8] sm:$0xff]  ;;  %v44_v10 = vld [vmem:[%s297_s1 + $0xd0] sm:$0xff] }
   0x4   :  { %136 = vmatprep.subr.mxu0 %v48_v2  ;;  %v30_v7 = vld [vmem:[%s297_s1 + $0x60] sm:$0xff]  ;;  %v29_v9 = vld [vmem:[%s297_s1 + $0x58] sm:$0xff]  ;;  %v28_v11 = vld [vmem:[%s297_s1 + $0x50] sm:$0xff] }
   0x5   :  { %137 = vmatpush3.msra.mxu0 %v32_v3  ;;  %v43_v12 = vld [vmem:[%s297_s1 + $0xc8] sm:$0xff]  ;;  %v42_v15 = vld [vmem:[%s297_s1 + $0xc0] sm:$0xff]  ;;  %v41_v17 = vld [vmem:[%s297_s1 + $0xb8] sm:$0xff] }
   0x6   :  { %138 = vmatprep.subr.mxu0 %v47_v4  ;;  %v17_v13 = vld [vmem:[%s298_s0 + $0x8] sm:$0xff]  ;;  %v26_v16 = vld [vmem:[%s297_s1 + $0x40] sm:$0xff]  ;;  %v25_v18 = vld [vmem:[%s297_s1 + $0x38] sm:$0xff] }
   0x7   :  { %139 = vmatpush3.msra.mxu0 %v31_v5  ;;  %v27_v14 = vld [vmem:[%s297_s1 + $0x48] sm:$0xff]  ;;  %121 = vmatprep.mubr.f32.mxu0 %v17_v13  ;;  %v40_v19 = vld [vmem:[%s297_s1 + $0xb0] sm:$0xff]  ;;  %v38_v23 = vld [vmem:[%s297_s1 + $0xa0] sm:$0xff] }
   0x8   :  { %140 = vmatprep.subr.mxu0 %v46_v6  ;;  %v24_v20 = vld [vmem:[%s297_s1 + $0x30] sm:$0xff]  ;;  %v39_v21 = vld [vmem:[%s297_s1 + $0xa8] sm:$0xff]  ;;  %v22_v24 = vld [vmem:[%s297_s1 + $0x20] sm:$0xff] }
   0x9   :  { %141 = vmatpush3.msra.mxu0 %v30_v7  ;;  %v23_v22 = vld [vmem:[%s297_s1 + $0x28] sm:$0xff]  ;;  %v37_v25 = vld [vmem:[%s297_s1 + $0x98] sm:$0xff]  ;;  %v36_v27 = vld [vmem:[%s297_s1 + $0x90] sm:$0xff] }
   0xa   :  { %142 = vmatprep.subr.mxu0 %v45_v8  ;;  %v21_v26 = vld [vmem:[%s297_s1 + $0x18] sm:$0xff]  ;;  %v20_v28 = vld [vmem:[%s297_s1 + $0x10] sm:$0xff]  ;;  %v35_v29 = vld [vmem:[%s297_s1 + $0x88] sm:$0xff] }
   0xb   :  { %143 = vmatpush3.msra.mxu0 %v29_v9  ;;  %v19_v30 = vld [vmem:[%s297_s1 + $0x8] sm:$0xff]  ;;  %v34_v31 = vld [vmem:[%s297_s1 + $0x80] sm:$0xff] }
   0xc   :  { %144 = vmatprep.subr.mxu0 %v44_v10  ;;  %v18_v32 = vld [vmem:[%s297_s1] sm:$0xff] }
   0xd   :  { %145 = vmatpush3.msra.mxu0 %v28_v11  ;;  %v16_v33 = vld [vmem:[%s298_s0] sm:$0xff] }
   0xe   :  { %146 = vmatprep.subr.mxu0 %v43_v12  ;;  %v133_v36 = vld [vmem:[#allocation2] ss:$0 sm:$0xff] }
   0xf   :  { %147 = vmatpush3.msra.mxu0 %v27_v14 }
  0x10   :  { %148 = vmatprep.subr.mxu0 %v42_v15 }
  0x11   :  { %149 = vmatpush3.msra.mxu0 %v26_v16 }
  0x12   :  { %150 = vmatprep.subr.mxu0 %v41_v17 }
  0x13   :  { %151 = vmatpush3.msra.mxu0 %v25_v18 }
  0x14   :  { %152 = vmatprep.subr.mxu0 %v40_v19 }
  0x15   :  { %153 = vmatpush3.msra.mxu0 %v24_v20 }
  0x16   :  { %154 = vmatprep.subr.mxu0 %v39_v21 }
  0x17   :  { %155 = vmatpush3.msra.mxu0 %v23_v22 }
  0x18   :  { %156 = vmatprep.subr.mxu0 %v38_v23 }
  0x19   :  { %157 = vmatpush3.msra.mxu0 %v22_v24 }
  0x1a   :  { %158 = vmatprep.subr.mxu0 %v37_v25 }
  0x1b   :  { %159 = vmatpush3.msra.mxu0 %v21_v26 }
  0x1c   :  { %160 = vmatprep.subr.mxu0 %v36_v27 }
  0x1d   :  { %161 = vmatpush3.msra.mxu0 %v20_v28 }
  0x1e   :  { %162 = vmatprep.subr.mxu0 %v35_v29 }
  0x1f   :  { %163 = vmatpush3.msra.mxu0 %v19_v30 }
  0x20   :  { %164 = vmatprep.subr.mxu0 %v34_v31 }
  0x21   :  { %165 = vmatpush3.msra.mxu0 %v18_v32 }
  0x22   :  { %122 = vmatmul.mubr.f32.vlgmr.msra.gmra.mxu0 %v16_v33 }
  0xe2   :  { %v166_v35 = vpop.f32.mrf.mxu0 }
  0xe4   :  { %v167_v37 = vpop.f32.mrf.mxu0 }
  0xe5   :  { %v168_v38 = vadd.f32 %v167_v37, %v166_v35 }
  0xe7   :  { %v124_v39 = vadd.f32 %v168_v38, %v133_v36 }
  0xe9   :  { %128 = vst.msk [vmem:[%s300_s3] sm:$0xff] %vm127_vm0, %v124_v39 }

</bundles_post_ra>
